<compile_context>
chip_gen: v7x
topology: tpu7x:2x2x1
jax: 0.10.0
libtpu: 0.0.40
codegen_flags: <defaults>
</compile_context>

<pallas_src>
import math

import numpy as np
import jax
import jax.numpy as jnp
from jax.experimental import pallas as pl
from jax.experimental.pallas import tpu as pltpu

# ---------------- configuration (mirrors `arguments` / `design` of QNet) ---------------
ARGS = dict(
    a_insize=5, v_insize=6, t_insize=7,
    a_hidsize=4, v_hidsize=4, t_hidsize=4,   # sum = 3 * num_qubits
    num_qubits=4, num_layers=6,
)
NQ = ARGS["num_qubits"]
NL = ARGS["num_layers"]
DIM = 2 ** NQ          # 16 amplitudes
LANES = 128            # statevector padded to one full lane row

# design rows: [zz_wire_a, zz_wire_b, single_qubit_wire, axis_code]
# sentinel NQ means "slot unused"; axis codes: 1 = X, 2 = Y, 3 = Z (Rot w/ input feats)
DESIGN = [
    [0, NQ, 2, NQ, 1, NQ],
    [1, NQ, 3, NQ, 2, NQ],
    [NQ, 0, NQ, 3, NQ, 2],
    [0, 1, 0, 2, 0, 3],
]


# ---------------- fused forward kernel -------------------------------------------------
def _make_fused_kernel(TB, T, hsizes, trailing_rot_wires):
    Ha, Hv, Ht = hsizes
    HH = Ha + Hv + Ht                                   # 12 == 3 * NQ

    def kernel(xa_ref, xv_ref, xt_ref,
               wa_ref, wv_ref, wt_ref, bias_ref, whh_ref,
               aang_ref, cang_ref, urT_ref, uiT_ref, wz_ref,
               out_ref):
        f32 = jnp.float32

        # ---- 1. input projection for ALL time steps: 3 wide MXU dots (parallel part) ----
        pre = (jnp.dot(xa_ref[...], wa_ref[...], preferred_element_type=f32)
               + jnp.dot(xv_ref[...], wv_ref[...], preferred_element_type=f32)
               + jnp.dot(xt_ref[...], wt_ref[...], preferred_element_type=f32)
               + bias_ref[...])                                        # (TB, T*HH)

        # ---- 2. merged recurrence: ONE tanh per step over (TB, HH) ----------------------
        whh = whh_ref[...]                                             # block-diag (HH, HH)
        h = jnp.tanh(pre[:, 0:HH])                                     # h_{-1} = 0
        for t in range(1, T):
            h = jnp.tanh(pre[:, t * HH:(t + 1) * HH]
                         + jnp.dot(h, whh, preferred_element_type=f32))

        # ---- 3. batched Rot-angle transcendentals: 1 small dot + 2 wide EUP passes ------
        # ang cols per wire q: (phi+omega)/2, (phi-omega)/2, theta/2  (phi etc. = (h+1)*pi/2)
        ang = jnp.dot(h, aang_ref[...], preferred_element_type=f32) + cang_ref[...]
        ca = jnp.cos(ang)                                              # (TB, 3*NQ)
        sa = jnp.sin(ang)

        # ---- 4. 4-qubit statevector sim on a 128-lane padded row ------------------------
        lane = jax.lax.broadcasted_iota(jnp.int32, (1, LANES), 1)
        lanef = lane.astype(f32)
        bitb, selb, masks = [], [], []
        for q in range(NQ):
            mask = 1 << (NQ - 1 - q)                                   # wire 0 = MSB
            bitb.append(((lane >> (NQ - 1 - q)) & 1).astype(f32))      # (1, LANES)
            # partner(k) = k ^ mask.  Compare a rolled iota against lane^mask so the
            # branch selection is independent of the roll direction convention.
            xorf = jnp.bitwise_xor(lane, mask).astype(f32)
            selb.append(pltpu.roll(lanef, mask, 1) == xorf)            # (1, LANES) bool
            masks.append(mask)

        def bitflip(s, q):
            m = masks[q]
            return jnp.where(selb[q],
                             pltpu.roll(s, m, 1),
                             pltpu.roll(s, LANES - m, 1))

        def apply_rot(s_re, s_im, q):
            # PennyLane Rot(phi, theta, omega) = RZ(omega) RY(theta) RZ(phi) on wire q.
            c0 = 3 * q
            cpo = ca[:, c0:c0 + 1];   spo = sa[:, c0:c0 + 1]
            cpm = ca[:, c0 + 1:c0 + 2]; spm = sa[:, c0 + 1:c0 + 2]
            ct = ca[:, c0 + 2:c0 + 3];  st = sa[:, c0 + 2:c0 + 3]
            sgn = 2.0 * bitb[q] - 1.0                                  # -1 on bit==0 lanes
            cd_re = cpo * ct                                           # u00_re == u11_re
            cd_im = (spo * ct) * sgn                                   # -spo*ct / +spo*ct
            co_re = (cpm * st) * sgn                                   # -cpm*st / +cpm*st
            co_im = -(spm * st)                                        # u01_im == u10_im
            g_re = bitflip(s_re, q)
            g_im = bitflip(s_im, q)
            n_re = cd_re * s_re - cd_im * s_im + co_re * g_re - co_im * g_im
            n_im = cd_re * s_im + cd_im * s_re + co_re * g_im + co_im * g_re
            return n_re, n_im

        # |0...0>  (broadcasts up to (TB, LANES) at the first gate)
        s_re = (lane == 0).astype(f32)
        s_im = jnp.zeros((1, LANES), f32)

        # encoding layer: Rot(feats of wire q) on wire q
        for q in range(NQ):
            s_re, s_im = apply_rot(s_re, s_im, q)

        # pre-composed batch-independent variational prefix: one complex matrix apply
        urT = urT_ref[...]
        uiT = uiT_ref[...]
        n_re = (jnp.dot(s_re, urT, preferred_element_type=f32)
                - jnp.dot(s_im, uiT, preferred_element_type=f32))
        n_im = (jnp.dot(s_re, uiT, preferred_element_type=f32)
                + jnp.dot(s_im, urT, preferred_element_type=f32))
        s_re, s_im = n_re, n_im

        # remaining data-dependent Rot layers (reuse the encoding angles of that wire)
        for w in trailing_rot_wires:
            s_re, s_im = apply_rot(s_re, s_im, w)

        # ---- 5. <Z_q> expvals + Linear + tanh*3 as ONE lane reduction -------------------
        probs = s_re * s_re + s_im * s_im                              # (TB, LANES)
        acc = jnp.sum(probs * wz_ref[...], axis=1, keepdims=True)      # reg bias folded in
        out_ref[...] = jnp.tanh(acc) * 3.0

    return kernel


# ---------------- wrapper-side parameter preprocessing ---------------------------------
def _precompose_variational(qw):
    """Fold all batch-independent layers before the first data-dependent Rot into one
    16x16 unitary; return its (zero-padded, transposed) real/imag parts + the wires of the
    remaining data-dependent Rot layers (static)."""
    idx = np.arange(DIM)
    bits = [((idx >> (NQ - 1 - q)) & 1).astype(np.float32) for q in range(NQ)]
    zsg = [1.0 - 2.0 * b for b in bits]
    eye = jnp.eye(DIM, dtype=jnp.float32)
    Ur, Ui = eye, jnp.zeros((DIM, DIM), jnp.float32)
    trailing = []
    seen_data_gate = False
    for i in range(NL):
        if DESIGN[0][i] != NQ:                                   # IsingZZ (diagonal)
            assert not seen_data_gate  # TODO(synk): param gates after a data Rot
            a, b = DESIGN[0][i], DESIGN[1][i]
            ph = (-0.5 * qw[i]) * jnp.asarray(zsg[a] * zsg[b])   # (16,)
            cph, sph = jnp.cos(ph)[:, None], jnp.sin(ph)[:, None]
            Ur, Ui = cph * Ur - sph * Ui, cph * Ui + sph * Ur
        elif DESIGN[2][i] != NQ:
            w, axis = DESIGN[2][i], DESIGN[3][i]
            if axis == 3:                                        # data-dependent Rot
                seen_data_gate = True
                trailing.append(w)
                continue
            assert not seen_data_gate  # TODO(synk): param gates after a data Rot
            mask = 1 << (NQ - 1 - w)
            flip = jnp.asarray(((idx[:, None] ^ mask) == idx[None, :]).astype(np.float32))
            c, s = jnp.cos(0.5 * qw[i]), jnp.sin(0.5 * qw[i])
            if axis == 1:                                        # RX
                Gr, Gi = c * eye, (-s) * flip
            else:                                                # RY (axis == 2)
                sgn = jnp.asarray((2.0 * bits[w] - 1.0)[:, None])
                Gr, Gi = c * eye + s * (sgn * flip), jnp.zeros((DIM, DIM), jnp.float32)
            Ur, Ui = Gr @ Ur - Gi @ Ui, Gr @ Ui + Gi @ Ur
    UrT = jnp.zeros((LANES, LANES), jnp.float32).at[:DIM, :DIM].set(Ur.T)
    UiT = jnp.zeros((LANES, LANES), jnp.float32).at[:DIM, :DIM].set(Ui.T)
    return UrT, UiT, tuple(trailing)


def _angle_matrices(HH):
    """h_cat (B,HH) -> half-angles (B,HH) as one affine map (folds the (h+1)*pi/2 scale)."""
    A = np.zeros((HH, HH), np.float32)
    c = np.zeros((1, HH), np.float32)
    q4 = math.pi / 4.0
    for q in range(NQ):
        A[3 * q, 3 * q] = q4;     A[3 * q + 2, 3 * q] = q4;  c[0, 3 * q] = math.pi / 2.0
        A[3 * q, 3 * q + 1] = q4; A[3 * q + 2, 3 * q + 1] = -q4
        A[3 * q + 1, 3 * q + 2] = q4;                        c[0, 3 * q + 2] = q4
    return A, c


# ---------------- QNet forward (single pallas_call, batch grid) -------------------------
def qnet_forward(params, x_a, x_v, x_t):
    f32 = jnp.float32
    B, T, Ia = x_a.shape
    Iv, It = x_v.shape[2], x_t.shape[2]
    Ha = params["rnn_a"]["w_hh"].shape[0]
    Hv = params["rnn_v"]["w_hh"].shape[0]
    Ht = params["rnn_t"]["w_hh"].shape[0]
    HH = Ha + Hv + Ht
    assert HH == 3 * NQ

    def prep(p):
        return (jnp.transpose(p["w_ih"]).astype(f32),              # (I, H)
                jnp.transpose(p["w_hh"]).astype(f32),               # (H, H)
                (p["b_ih"] + p["b_hh"]).astype(f32))
    waT, waHT, ba = prep(params["rnn_a"])
    wvT, wvHT, bv = prep(params["rnn_v"])
    wtT, wtHT, bt = prep(params["rnn_t"])

    # block-diagonal input-projection matrices: (T*I, T*HH)
    def in_blk(wT, I, off, H):
        W = jnp.zeros((T * I, T * HH), f32)
        for t in range(T):
            W = W.at[t * I:(t + 1) * I, t * HH + off:t * HH + off + H].set(wT)
        return W
    Wa_blk = in_blk(waT, Ia, 0, Ha)
    Wv_blk = in_blk(wvT, Iv, Ha, Hv)
    Wt_blk = in_blk(wtT, It, Ha + Hv, Ht)

    bias_cat = jnp.concatenate([ba, bv, bt]).reshape(1, HH)
    bias_tiled = jnp.tile(bias_cat, (1, T))                         # (1, T*HH)

    whh_blk = jnp.zeros((HH, HH), f32)
    whh_blk = whh_blk.at[0:Ha, 0:Ha].set(waHT)
    whh_blk = whh_blk.at[Ha:Ha + Hv, Ha:Ha + Hv].set(wvHT)
    whh_blk = whh_blk.at[Ha + Hv:HH, Ha + Hv:HH].set(wtHT)

    A_ang, c_ang = _angle_matrices(HH)
    UrT, UiT, trailing = _precompose_variational(params["q_params"].astype(f32))

    # fused measurement weights: sum_q w_q * zsign_q[k], regressor bias folded in
    # (valid because the statevector stays normalized: sum_k probs[k] == 1).
    zrows = np.stack([1.0 - 2.0 * (((np.arange(DIM) >> (NQ - 1 - q)) & 1))
                      for q in range(NQ)]).astype(np.float32)       # (NQ, DIM)
    wz16 = (jnp.dot(params["reg_w"].reshape(1, NQ).astype(f32), jnp.asarray(zrows))
            + params["reg_b"].reshape(1, 1).astype(f32))
    wz = jnp.zeros((1, LANES), f32).at[:, :DIM].set(wz16)

    # free, batch-major reshapes (no transposes, no copies)
    xa2 = x_a.reshape(B, T * Ia).astype(f32)
    xv2 = x_v.reshape(B, T * Iv).astype(f32)
    xt2 = x_t.reshape(B, T * It).astype(f32)

    # batch tile: biggest power-of-two tile that divides B (keeps the (8,128) rule and
    # leaves plenty of VMEM headroom on all of v5e/v6e/v7x), else a single full block.
    TB = B
    for cand in (1024, 512, 256, 128, 64, 32, 16, 8):
        if B % cand == 0:
            TB = cand
            break
    grid = (B // TB,)

    bmap = lambda i: (i, 0)      # batch-blocked operands
    wmap = lambda i: (0, 0)      # weights / constants (not re-streamed)

    in_specs = [
        pl.BlockSpec((TB, T * Ia), bmap),
        pl.BlockSpec((TB, T * Iv), bmap),
        pl.BlockSpec((TB, T * It), bmap),
        pl.BlockSpec((T * Ia, T * HH), wmap),
        pl.BlockSpec((T * Iv, T * HH), wmap),
        pl.BlockSpec((T * It, T * HH), wmap),
        pl.BlockSpec((1, T * HH), wmap),
        pl.BlockSpec((HH, HH), wmap),
        pl.BlockSpec((HH, HH), wmap),
        pl.BlockSpec((1, HH), wmap),
        pl.BlockSpec((LANES, LANES), wmap),
        pl.BlockSpec((LANES, LANES), wmap),
        pl.BlockSpec((1, LANES), wmap),
    ]
    out_spec = pl.BlockSpec((TB, 1), bmap)

    out = pl.pallas_call(
        _make_fused_kernel(TB, T, (Ha, Hv, Ht), trailing),
        out_shape=jax.ShapeDtypeStruct((B, 1), f32),
        grid=grid,
        in_specs=in_specs,
        out_specs=out_spec,
        compiler_params=pltpu.CompilerParams(dimension_semantics=("parallel",)),
    )(xa2, xv2, xt2, Wa_blk, Wv_blk, Wt_blk, bias_tiled, whh_blk,
      jnp.asarray(A_ang), jnp.asarray(c_ang), UrT, UiT, wz)
    return out[:, 0]                                                # (B,)


# ---------------- deterministic parameter init -------------------------------------------
def init_params(key):
    ks = jax.random.split(key, 6)

    def rnn_p(k, insize, hid):
        k1, k2, k3, k4 = jax.random.split(k, 4)
        s = 1.0 / np.sqrt(hid)
        u = lambda kk, shape: jax.random.uniform(kk, shape, jnp.float32, -s, s)
        return dict(w_ih=u(k1, (hid, insize)), w_hh=u(k2, (hid, hid)),
                    b_ih=u(k3, (hid,)), b_hh=u(k4, (hid,)))

    s = 1.0 / np.sqrt(NQ)
    return dict(
        rnn_a=rnn_p(ks[0], ARGS["a_insize"], ARGS["a_hidsize"]),
        rnn_v=rnn_p(ks[1], ARGS["v_insize"], ARGS["v_hidsize"]),
        rnn_t=rnn_p(ks[2], ARGS["t_insize"], ARGS["t_hidsize"]),
        q_params=jax.random.normal(ks[3], (NL,), jnp.float32),
        reg_w=jax.random.uniform(ks[4], (1, NQ), jnp.float32, -s, s),
        reg_b=jax.random.uniform(ks[5], (1,), jnp.float32, -s, s),
    )


# ---------------- numpy reference (same math as the PyTorch/PennyLane module) ------------
def reference_forward(params, x_a, x_v, x_t):
    p = jax.tree_util.tree_map(np.asarray, params)

    def rnn(x, rp):
        x = np.asarray(x, np.float32).transpose(1, 0, 2)
        h = np.zeros((x.shape[1], rp["w_hh"].shape[0]), np.float32)
        for t in range(x.shape[0]):
            h = np.tanh(x[t] @ rp["w_ih"].T + rp["b_ih"] + h @ rp["w_hh"].T + rp["b_hh"])
        return h

    a_h, v_h, t_h = rnn(x_a, p["rnn_a"]), rnn(x_v, p["rnn_v"]), rnn(x_t, p["rnn_t"])
    sc = lambda h: (h + 1.0) / 2.0 * math.pi
    x_p = np.concatenate([sc(a_h), sc(v_h), sc(t_h)], axis=1)

    I2 = np.eye(2, dtype=np.complex128)
    Z = np.diag([1.0, -1.0]).astype(np.complex128)

    def kron_all(mats):
        out = mats[0]
        for m in mats[1:]:
            out = np.kron(out, m)
        return out

    def full_1q(U, w):
        mats = [I2] * NQ
        mats[w] = U
        return kron_all(mats)

    def rot(phi, th, om):
        return np.array(
            [[np.exp(-1j * (phi + om) / 2) * np.cos(th / 2),
              -np.exp(1j * (phi - om) / 2) * np.sin(th / 2)],
             [np.exp(-1j * (phi - om) / 2) * np.sin(th / 2),
              np.exp(1j * (phi + om) / 2) * np.cos(th / 2)]], dtype=np.complex128)

    def rx(th):
        return np.array([[np.cos(th / 2), -1j * np.sin(th / 2)],
                         [-1j * np.sin(th / 2), np.cos(th / 2)]], dtype=np.complex128)

    def ry(th):
        return np.array([[np.cos(th / 2), -np.sin(th / 2)],
                         [np.sin(th / 2), np.cos(th / 2)]], dtype=np.complex128)

    def zz(th, a, b):
        mats = [I2] * NQ
        mats[a] = Z
        mats[b] = Z
        ZZ = kron_all(mats)
        return np.diag(np.exp(-1j * th / 2 * np.diagonal(ZZ)))

    qw = p["q_params"]
    exps = []
    for bi in range(x_p.shape[0]):
        feats = x_p[bi].reshape(NQ, 3)
        state = np.zeros(DIM, np.complex128)
        state[0] = 1.0
        for q in range(NQ):
            state = full_1q(rot(*feats[q]), q) @ state
        for i in range(NL):
            if DESIGN[0][i] != NQ:
                state = zz(qw[i], DESIGN[0][i], DESIGN[1][i]) @ state
            elif DESIGN[2][i] != NQ:
                w, axis = DESIGN[2][i], DESIGN[3][i]
                if axis == 1:
                    state = full_1q(rx(qw[i]), w) @ state
                elif axis == 2:
                    state = full_1q(ry(qw[i]), w) @ state
                elif axis == 3:
                    state = full_1q(rot(*feats[w]), w) @ state
        probs = np.abs(state) ** 2
        ev = [float(np.sum(probs * (1.0 - 2.0 * ((np.arange(DIM) >> (NQ - 1 - q)) & 1))))
              for q in range(NQ)]
        exps.append(ev)
    exps = np.array(exps, np.float64)
    return (np.tanh(exps @ p["reg_w"].T.astype(np.float64)
                    + p["reg_b"].astype(np.float64)) * 3.0)[:, 0]


# ---------------- main --------------------------------------------------------------------
if __name__ == "__main__":
    key = jax.random.PRNGKey(0)
    kp, ka, kv, kt = jax.random.split(key, 4)
    params = init_params(kp)

    B, T = 2, 8
    x_a = jax.random.normal(ka, (B, T, ARGS["a_insize"]), jnp.float32)
    x_v = jax.random.normal(kv, (B, T, ARGS["v_insize"]), jnp.float32)
    x_t = jax.random.normal(kt, (B, T, ARGS["t_insize"]), jnp.float32)

    out = jax.jit(qnet_forward)(params, x_a, x_v, x_t)
    out = jax.block_until_ready(out)

    ref = reference_forward(params, x_a, x_v, x_t)
    np.testing.assert_allclose(np.asarray(out, np.float64), ref, rtol=2e-3, atol=2e-3)
    print("KERNEL_OK")
</pallas_src>

<mosaic_0001>
module attributes {stable_mosaic.version = 11 : i64} {
  func.func @kernel(%arg0: i32, %arg1: memref<2x40xf32, #tpu.memory_space<vmem>>, %arg2: memref<2x48xf32, #tpu.memory_space<vmem>>, %arg3: memref<2x56xf32, #tpu.memory_space<vmem>>, %arg4: memref<40x96xf32, #tpu.memory_space<vmem>>, %arg5: memref<48x96xf32, #tpu.memory_space<vmem>>, %arg6: memref<56x96xf32, #tpu.memory_space<vmem>>, %arg7: memref<1x96xf32, #tpu.memory_space<vmem>>, %arg8: memref<12x12xf32, #tpu.memory_space<vmem>>, %arg9: memref<12x12xf32, #tpu.memory_space<vmem>>, %arg10: memref<1x12xf32, #tpu.memory_space<vmem>>, %arg11: memref<128x128xf32, #tpu.memory_space<vmem>>, %arg12: memref<128x128xf32, #tpu.memory_space<vmem>>, %arg13: memref<1x128xf32, #tpu.memory_space<vmem>>, %arg14: memref<2x1xf32, #tpu.memory_space<vmem>>) attributes {dimension_semantics = [#tpu.dimension_semantics<parallel>], iteration_bounds = array<i64: 1>, scalar_prefetch = 0 : i64, scratch_operands = 0 : i64, tpu.core_type = #tpu.core_type<tc>, window_params = [{transform_indices = @transform_0, window_bounds = array<i64: 2, 40>}, {transform_indices = @transform_1, window_bounds = array<i64: 2, 48>}, {transform_indices = @transform_2, window_bounds = array<i64: 2, 56>}, {pipeline_mode = #tpu.pipeline_mode<synchronous>, transform_indices = @transform_3, window_bounds = array<i64: 40, 96>}, {pipeline_mode = #tpu.pipeline_mode<synchronous>, transform_indices = @transform_4, window_bounds = array<i64: 48, 96>}, {pipeline_mode = #tpu.pipeline_mode<synchronous>, transform_indices = @transform_5, window_bounds = array<i64: 56, 96>}, {pipeline_mode = #tpu.pipeline_mode<synchronous>, transform_indices = @transform_6, window_bounds = array<i64: 1, 96>}, {pipeline_mode = #tpu.pipeline_mode<synchronous>, transform_indices = @transform_7, window_bounds = array<i64: 12, 12>}, {pipeline_mode = #tpu.pipeline_mode<synchronous>, transform_indices = @transform_8, window_bounds = array<i64: 12, 12>}, {pipeline_mode = #tpu.pipeline_mode<synchronous>, transform_indices = @transform_9, window_bounds = array<i64: 1, 12>}, {pipeline_mode = #tpu.pipeline_mode<synchronous>, transform_indices = @transform_10, window_bounds = array<i64: 128, 128>}, {pipeline_mode = #tpu.pipeline_mode<synchronous>, transform_indices = @transform_11, window_bounds = array<i64: 128, 128>}, {pipeline_mode = #tpu.pipeline_mode<synchronous>, transform_indices = @transform_12, window_bounds = array<i64: 1, 128>}, {transform_indices = @transform_13, window_bounds = array<i64: 2, 1>}]} {
    %c0 = arith.constant 0 : index
    %c0_0 = arith.constant 0 : index
    %0 = vector.load %arg1[%c0, %c0_0] : memref<2x40xf32, #tpu.memory_space<vmem>>, vector<2x40xf32>
    %c0_1 = arith.constant 0 : index
    %c0_2 = arith.constant 0 : index
    %1 = vector.load %arg4[%c0_1, %c0_2] : memref<40x96xf32, #tpu.memory_space<vmem>>, vector<40x96xf32>
    %cst = arith.constant dense<0.000000e+00> : vector<2x96xf32>
    %2 = tpu.matmul %0, %1, %cst {dimension_numbers = #tpu.dot_dimension_numbers<[1], [0], [0], [1], [0, 0, 1, 1], [], []>} : vector<2x40xf32>, vector<40x96xf32>, vector<2x96xf32> -> vector<2x96xf32>
    %c0_3 = arith.constant 0 : index
    %c0_4 = arith.constant 0 : index
    %3 = vector.load %arg2[%c0_3, %c0_4] : memref<2x48xf32, #tpu.memory_space<vmem>>, vector<2x48xf32>
    %c0_5 = arith.constant 0 : index
    %c0_6 = arith.constant 0 : index
    %4 = vector.load %arg5[%c0_5, %c0_6] : memref<48x96xf32, #tpu.memory_space<vmem>>, vector<48x96xf32>
    %cst_7 = arith.constant dense<0.000000e+00> : vector<2x96xf32>
    %5 = tpu.matmul %3, %4, %cst_7 {dimension_numbers = #tpu.dot_dimension_numbers<[1], [0], [0], [1], [0, 0, 1, 1], [], []>} : vector<2x48xf32>, vector<48x96xf32>, vector<2x96xf32> -> vector<2x96xf32>
    %6 = arith.addf %2, %5 : vector<2x96xf32>
    %c0_8 = arith.constant 0 : index
    %c0_9 = arith.constant 0 : index
    %7 = vector.load %arg3[%c0_8, %c0_9] : memref<2x56xf32, #tpu.memory_space<vmem>>, vector<2x56xf32>
    %c0_10 = arith.constant 0 : index
    %c0_11 = arith.constant 0 : index
    %8 = vector.load %arg6[%c0_10, %c0_11] : memref<56x96xf32, #tpu.memory_space<vmem>>, vector<56x96xf32>
    %cst_12 = arith.constant dense<0.000000e+00> : vector<2x96xf32>
    %9 = tpu.matmul %7, %8, %cst_12 {dimension_numbers = #tpu.dot_dimension_numbers<[1], [0], [0], [1], [0, 0, 1, 1], [], []>} : vector<2x56xf32>, vector<56x96xf32>, vector<2x96xf32> -> vector<2x96xf32>
    %10 = arith.addf %6, %9 : vector<2x96xf32>
    %c0_13 = arith.constant 0 : index
    %c0_14 = arith.constant 0 : index
    %11 = vector.load %arg7[%c0_13, %c0_14] : memref<1x96xf32, #tpu.memory_space<vmem>>, vector<1x96xf32>
    %12 = vector.broadcast %11 : vector<1x96xf32> to vector<2x96xf32>
    %13 = arith.addf %10, %12 : vector<2x96xf32>
    %c0_15 = arith.constant 0 : index
    %c0_16 = arith.constant 0 : index
    %14 = vector.load %arg8[%c0_15, %c0_16] : memref<12x12xf32, #tpu.memory_space<vmem>>, vector<12x12xf32>
    %15 = vector.extract_strided_slice %13 {offsets = [0, 0], sizes = [2, 12], strides = [1, 1]} : vector<2x96xf32> to vector<2x12xf32>
    %16 = math.tanh %15 : vector<2x12xf32>
    %17 = vector.extract_strided_slice %13 {offsets = [0, 12], sizes = [2, 12], strides = [1, 1]} : vector<2x96xf32> to vector<2x12xf32>
    %cst_17 = arith.constant dense<0.000000e+00> : vector<2x12xf32>
    %18 = tpu.matmul %16, %14, %cst_17 {dimension_numbers = #tpu.dot_dimension_numbers<[1], [0], [0], [1], [0, 0, 1, 1], [], []>} : vector<2x12xf32>, vector<12x12xf32>, vector<2x12xf32> -> vector<2x12xf32>
    %19 = arith.addf %17, %18 : vector<2x12xf32>
    %20 = math.tanh %19 : vector<2x12xf32>
    %21 = vector.extract_strided_slice %13 {offsets = [0, 24], sizes = [2, 12], strides = [1, 1]} : vector<2x96xf32> to vector<2x12xf32>
    %cst_18 = arith.constant dense<0.000000e+00> : vector<2x12xf32>
    %22 = tpu.matmul %20, %14, %cst_18 {dimension_numbers = #tpu.dot_dimension_numbers<[1], [0], [0], [1], [0, 0, 1, 1], [], []>} : vector<2x12xf32>, vector<12x12xf32>, vector<2x12xf32> -> vector<2x12xf32>
    %23 = arith.addf %21, %22 : vector<2x12xf32>
    %24 = math.tanh %23 : vector<2x12xf32>
    %25 = vector.extract_strided_slice %13 {offsets = [0, 36], sizes = [2, 12], strides = [1, 1]} : vector<2x96xf32> to vector<2x12xf32>
    %cst_19 = arith.constant dense<0.000000e+00> : vector<2x12xf32>
    %26 = tpu.matmul %24, %14, %cst_19 {dimension_numbers = #tpu.dot_dimension_numbers<[1], [0], [0], [1], [0, 0, 1, 1], [], []>} : vector<2x12xf32>, vector<12x12xf32>, vector<2x12xf32> -> vector<2x12xf32>
    %27 = arith.addf %25, %26 : vector<2x12xf32>
    %28 = math.tanh %27 : vector<2x12xf32>
    %29 = vector.extract_strided_slice %13 {offsets = [0, 48], sizes = [2, 12], strides = [1, 1]} : vector<2x96xf32> to vector<2x12xf32>
    %cst_20 = arith.constant dense<0.000000e+00> : vector<2x12xf32>
    %30 = tpu.matmul %28, %14, %cst_20 {dimension_numbers = #tpu.dot_dimension_numbers<[1], [0], [0], [1], [0, 0, 1, 1], [], []>} : vector<2x12xf32>, vector<12x12xf32>, vector<2x12xf32> -> vector<2x12xf32>
    %31 = arith.addf %29, %30 : vector<2x12xf32>
    %32 = math.tanh %31 : vector<2x12xf32>
    %33 = vector.extract_strided_slice %13 {offsets = [0, 60], sizes = [2, 12], strides = [1, 1]} : vector<2x96xf32> to vector<2x12xf32>
    %cst_21 = arith.constant dense<0.000000e+00> : vector<2x12xf32>
    %34 = tpu.matmul %32, %14, %cst_21 {dimension_numbers = #tpu.dot_dimension_numbers<[1], [0], [0], [1], [0, 0, 1, 1], [], []>} : vector<2x12xf32>, vector<12x12xf32>, vector<2x12xf32> -> vector<2x12xf32>
    %35 = arith.addf %33, %34 : vector<2x12xf32>
    %36 = math.tanh %35 : vector<2x12xf32>
    %37 = vector.extract_strided_slice %13 {offsets = [0, 72], sizes = [2, 12], strides = [1, 1]} : vector<2x96xf32> to vector<2x12xf32>
    %cst_22 = arith.constant dense<0.000000e+00> : vector<2x12xf32>
    %38 = tpu.matmul %36, %14, %cst_22 {dimension_numbers = #tpu.dot_dimension_numbers<[1], [0], [0], [1], [0, 0, 1, 1], [], []>} : vector<2x12xf32>, vector<12x12xf32>, vector<2x12xf32> -> vector<2x12xf32>
    %39 = arith.addf %37, %38 : vector<2x12xf32>
    %40 = math.tanh %39 : vector<2x12xf32>
    %41 = vector.extract_strided_slice %13 {offsets = [0, 84], sizes = [2, 12], strides = [1, 1]} : vector<2x96xf32> to vector<2x12xf32>
    %cst_23 = arith.constant dense<0.000000e+00> : vector<2x12xf32>
    %42 = tpu.matmul %40, %14, %cst_23 {dimension_numbers = #tpu.dot_dimension_numbers<[1], [0], [0], [1], [0, 0, 1, 1], [], []>} : vector<2x12xf32>, vector<12x12xf32>, vector<2x12xf32> -> vector<2x12xf32>
    %43 = arith.addf %41, %42 : vector<2x12xf32>
    %44 = math.tanh %43 : vector<2x12xf32>
    %c0_24 = arith.constant 0 : index
    %c0_25 = arith.constant 0 : index
    %45 = vector.load %arg9[%c0_24, %c0_25] : memref<12x12xf32, #tpu.memory_space<vmem>>, vector<12x12xf32>
    %cst_26 = arith.constant dense<0.000000e+00> : vector<2x12xf32>
    %46 = tpu.matmul %44, %45, %cst_26 {dimension_numbers = #tpu.dot_dimension_numbers<[1], [0], [0], [1], [0, 0, 1, 1], [], []>} : vector<2x12xf32>, vector<12x12xf32>, vector<2x12xf32> -> vector<2x12xf32>
    %c0_27 = arith.constant 0 : index
    %c0_28 = arith.constant 0 : index
    %47 = vector.load %arg10[%c0_27, %c0_28] : memref<1x12xf32, #tpu.memory_space<vmem>>, vector<1x12xf32>
    %48 = vector.broadcast %47 : vector<1x12xf32> to vector<2x12xf32>
    %49 = arith.addf %46, %48 : vector<2x12xf32>
    %50 = math.cos %49 : vector<2x12xf32>
    %51 = math.sin %49 : vector<2x12xf32>
    %52 = tpu.iota {dimensions = array<i32: 1>} : vector<1x128xi32>
    %53 = arith.sitofp %52 : vector<1x128xi32> to vector<1x128xf32>
    %c3_i32 = arith.constant 3 : i32
    %54 = vector.broadcast %c3_i32 : i32 to vector<1x128xi32>
    %55 = arith.shrsi %52, %54 : vector<1x128xi32>
    %c1_i32 = arith.constant 1 : i32
    %56 = vector.broadcast %c1_i32 : i32 to vector<1x128xi32>
    %57 = arith.andi %55, %56 : vector<1x128xi32>
    %58 = arith.sitofp %57 : vector<1x128xi32> to vector<1x128xf32>
    %c8_i32 = arith.constant 8 : i32
    %59 = vector.broadcast %c8_i32 : i32 to vector<1x128xi32>
    %60 = arith.xori %52, %59 : vector<1x128xi32>
    %61 = arith.sitofp %60 : vector<1x128xi32> to vector<1x128xf32>
    %c8_i32_29 = arith.constant 8 : i32
    %62 = tpu.dynamic_rotate %53 by %c8_i32_29 dim 1 : vector<1x128xf32>, i32 -> vector<1x128xf32>
    %63 = arith.cmpf oeq, %62, %61 : vector<1x128xf32>
    %c2_i32 = arith.constant 2 : i32
    %64 = vector.broadcast %c2_i32 : i32 to vector<1x128xi32>
    %65 = arith.shrsi %52, %64 : vector<1x128xi32>
    %c1_i32_30 = arith.constant 1 : i32
    %66 = vector.broadcast %c1_i32_30 : i32 to vector<1x128xi32>
    %67 = arith.andi %65, %66 : vector<1x128xi32>
    %68 = arith.sitofp %67 : vector<1x128xi32> to vector<1x128xf32>
    %c4_i32 = arith.constant 4 : i32
    %69 = vector.broadcast %c4_i32 : i32 to vector<1x128xi32>
    %70 = arith.xori %52, %69 : vector<1x128xi32>
    %71 = arith.sitofp %70 : vector<1x128xi32> to vector<1x128xf32>
    %c4_i32_31 = arith.constant 4 : i32
    %72 = tpu.dynamic_rotate %53 by %c4_i32_31 dim 1 : vector<1x128xf32>, i32 -> vector<1x128xf32>
    %73 = arith.cmpf oeq, %72, %71 : vector<1x128xf32>
    %c1_i32_32 = arith.constant 1 : i32
    %74 = vector.broadcast %c1_i32_32 : i32 to vector<1x128xi32>
    %75 = arith.shrsi %52, %74 : vector<1x128xi32>
    %c1_i32_33 = arith.constant 1 : i32
    %76 = vector.broadcast %c1_i32_33 : i32 to vector<1x128xi32>
    %77 = arith.andi %75, %76 : vector<1x128xi32>
    %78 = arith.sitofp %77 : vector<1x128xi32> to vector<1x128xf32>
    %c2_i32_34 = arith.constant 2 : i32
    %79 = vector.broadcast %c2_i32_34 : i32 to vector<1x128xi32>
    %80 = arith.xori %52, %79 : vector<1x128xi32>
    %81 = arith.sitofp %80 : vector<1x128xi32> to vector<1x128xf32>
    %c2_i32_35 = arith.constant 2 : i32
    %82 = tpu.dynamic_rotate %53 by %c2_i32_35 dim 1 : vector<1x128xf32>, i32 -> vector<1x128xf32>
    %83 = arith.cmpf oeq, %82, %81 : vector<1x128xf32>
    %c0_i32 = arith.constant 0 : i32
    %84 = vector.broadcast %c0_i32 : i32 to vector<1x128xi32>
    %85 = arith.shrsi %52, %84 : vector<1x128xi32>
    %c1_i32_36 = arith.constant 1 : i32
    %86 = vector.broadcast %c1_i32_36 : i32 to vector<1x128xi32>
    %87 = arith.andi %85, %86 : vector<1x128xi32>
    %88 = arith.sitofp %87 : vector<1x128xi32> to vector<1x128xf32>
    %c1_i32_37 = arith.constant 1 : i32
    %89 = vector.broadcast %c1_i32_37 : i32 to vector<1x128xi32>
    %90 = arith.xori %52, %89 : vector<1x128xi32>
    %91 = arith.sitofp %90 : vector<1x128xi32> to vector<1x128xf32>
    %c1_i32_38 = arith.constant 1 : i32
    %92 = tpu.dynamic_rotate %53 by %c1_i32_38 dim 1 : vector<1x128xf32>, i32 -> vector<1x128xf32>
    %93 = arith.cmpf oeq, %92, %91 : vector<1x128xf32>
    %c0_i32_39 = arith.constant 0 : i32
    %94 = vector.broadcast %c0_i32_39 : i32 to vector<1x128xi32>
    %95 = arith.cmpi eq, %52, %94 : vector<1x128xi32>
    %96 = arith.extui %95 : vector<1x128xi1> to vector<1x128xi32>
    %97 = arith.sitofp %96 : vector<1x128xi32> to vector<1x128xf32>
    %cst_40 = arith.constant 0.000000e+00 : f32
    %98 = vector.broadcast %cst_40 : f32 to vector<1x128xf32>
    %99 = vector.extract_strided_slice %50 {offsets = [0, 0], sizes = [2, 1], strides = [1, 1]} : vector<2x12xf32> to vector<2x1xf32>
    %100 = vector.extract_strided_slice %51 {offsets = [0, 0], sizes = [2, 1], strides = [1, 1]} : vector<2x12xf32> to vector<2x1xf32>
    %101 = vector.extract_strided_slice %50 {offsets = [0, 1], sizes = [2, 1], strides = [1, 1]} : vector<2x12xf32> to vector<2x1xf32>
    %102 = vector.extract_strided_slice %51 {offsets = [0, 1], sizes = [2, 1], strides = [1, 1]} : vector<2x12xf32> to vector<2x1xf32>
    %103 = vector.extract_strided_slice %50 {offsets = [0, 2], sizes = [2, 1], strides = [1, 1]} : vector<2x12xf32> to vector<2x1xf32>
    %104 = vector.extract_strided_slice %51 {offsets = [0, 2], sizes = [2, 1], strides = [1, 1]} : vector<2x12xf32> to vector<2x1xf32>
    %cst_41 = arith.constant 2.000000e+00 : f32
    %105 = vector.broadcast %cst_41 : f32 to vector<1x128xf32>
    %106 = arith.mulf %105, %58 : vector<1x128xf32>
    %cst_42 = arith.constant 1.000000e+00 : f32
    %107 = vector.broadcast %cst_42 : f32 to vector<1x128xf32>
    %108 = arith.subf %106, %107 : vector<1x128xf32>
    %109 = arith.mulf %99, %103 : vector<2x1xf32>
    %110 = arith.mulf %100, %103 : vector<2x1xf32>
    %111 = vector.broadcast %110 : vector<2x1xf32> to vector<2x128xf32>
    %112 = vector.broadcast %108 : vector<1x128xf32> to vector<2x128xf32>
    %113 = arith.mulf %111, %112 : vector<2x128xf32>
    %114 = arith.mulf %101, %104 : vector<2x1xf32>
    %115 = vector.broadcast %114 : vector<2x1xf32> to vector<2x128xf32>
    %116 = vector.broadcast %108 : vector<1x128xf32> to vector<2x128xf32>
    %117 = arith.mulf %115, %116 : vector<2x128xf32>
    %118 = arith.mulf %102, %104 : vector<2x1xf32>
    %cst_43 = arith.constant 0.000000e+00 : f32
    %119 = vector.broadcast %cst_43 : f32 to vector<2x1xf32>
    %120 = arith.subf %119, %118 : vector<2x1xf32>
    %c8_i32_44 = arith.constant 8 : i32
    %121 = tpu.dynamic_rotate %97 by %c8_i32_44 dim 1 : vector<1x128xf32>, i32 -> vector<1x128xf32>
    %c120_i32 = arith.constant 120 : i32
    %122 = tpu.dynamic_rotate %97 by %c120_i32 dim 1 : vector<1x128xf32>, i32 -> vector<1x128xf32>
    %123 = arith.select %63, %121, %122 : vector<1x128xi1>, vector<1x128xf32>
    %c8_i32_45 = arith.constant 8 : i32
    %124 = tpu.dynamic_rotate %98 by %c8_i32_45 dim 1 : vector<1x128xf32>, i32 -> vector<1x128xf32>
    %c120_i32_46 = arith.constant 120 : i32
    %125 = tpu.dynamic_rotate %98 by %c120_i32_46 dim 1 : vector<1x128xf32>, i32 -> vector<1x128xf32>
    %126 = arith.select %63, %124, %125 : vector<1x128xi1>, vector<1x128xf32>
    %127 = vector.broadcast %109 : vector<2x1xf32> to vector<2x128xf32>
    %128 = vector.broadcast %97 : vector<1x128xf32> to vector<2x128xf32>
    %129 = arith.mulf %127, %128 : vector<2x128xf32>
    %130 = vector.broadcast %98 : vector<1x128xf32> to vector<2x128xf32>
    %131 = arith.mulf %113, %130 : vector<2x128xf32>
    %132 = arith.subf %129, %131 : vector<2x128xf32>
    %133 = vector.broadcast %123 : vector<1x128xf32> to vector<2x128xf32>
    %134 = arith.mulf %117, %133 : vector<2x128xf32>
    %135 = arith.addf %132, %134 : vector<2x128xf32>
    %136 = vector.broadcast %120 : vector<2x1xf32> to vector<2x128xf32>
    %137 = vector.broadcast %126 : vector<1x128xf32> to vector<2x128xf32>
    %138 = arith.mulf %136, %137 : vector<2x128xf32>
    %139 = arith.subf %135, %138 : vector<2x128xf32>
    %140 = vector.broadcast %109 : vector<2x1xf32> to vector<2x128xf32>
    %141 = vector.broadcast %98 : vector<1x128xf32> to vector<2x128xf32>
    %142 = arith.mulf %140, %141 : vector<2x128xf32>
    %143 = vector.broadcast %97 : vector<1x128xf32> to vector<2x128xf32>
    %144 = arith.mulf %113, %143 : vector<2x128xf32>
    %145 = arith.addf %142, %144 : vector<2x128xf32>
    %146 = vector.broadcast %126 : vector<1x128xf32> to vector<2x128xf32>
    %147 = arith.mulf %117, %146 : vector<2x128xf32>
    %148 = arith.addf %145, %147 : vector<2x128xf32>
    %149 = vector.broadcast %120 : vector<2x1xf32> to vector<2x128xf32>
    %150 = vector.broadcast %123 : vector<1x128xf32> to vector<2x128xf32>
    %151 = arith.mulf %149, %150 : vector<2x128xf32>
    %152 = arith.addf %148, %151 : vector<2x128xf32>
    %153 = vector.extract_strided_slice %50 {offsets = [0, 3], sizes = [2, 1], strides = [1, 1]} : vector<2x12xf32> to vector<2x1xf32>
    %154 = vector.extract_strided_slice %51 {offsets = [0, 3], sizes = [2, 1], strides = [1, 1]} : vector<2x12xf32> to vector<2x1xf32>
    %155 = vector.extract_strided_slice %50 {offsets = [0, 4], sizes = [2, 1], strides = [1, 1]} : vector<2x12xf32> to vector<2x1xf32>
    %156 = vector.extract_strided_slice %51 {offsets = [0, 4], sizes = [2, 1], strides = [1, 1]} : vector<2x12xf32> to vector<2x1xf32>
    %157 = vector.extract_strided_slice %50 {offsets = [0, 5], sizes = [2, 1], strides = [1, 1]} : vector<2x12xf32> to vector<2x1xf32>
    %158 = vector.extract_strided_slice %51 {offsets = [0, 5], sizes = [2, 1], strides = [1, 1]} : vector<2x12xf32> to vector<2x1xf32>
    %cst_47 = arith.constant 2.000000e+00 : f32
    %159 = vector.broadcast %cst_47 : f32 to vector<1x128xf32>
    %160 = arith.mulf %159, %68 : vector<1x128xf32>
    %cst_48 = arith.constant 1.000000e+00 : f32
    %161 = vector.broadcast %cst_48 : f32 to vector<1x128xf32>
    %162 = arith.subf %160, %161 : vector<1x128xf32>
    %163 = arith.mulf %153, %157 : vector<2x1xf32>
    %164 = arith.mulf %154, %157 : vector<2x1xf32>
    %165 = vector.broadcast %164 : vector<2x1xf32> to vector<2x128xf32>
    %166 = vector.broadcast %162 : vector<1x128xf32> to vector<2x128xf32>
    %167 = arith.mulf %165, %166 : vector<2x128xf32>
    %168 = arith.mulf %155, %158 : vector<2x1xf32>
    %169 = vector.broadcast %168 : vector<2x1xf32> to vector<2x128xf32>
    %170 = vector.broadcast %162 : vector<1x128xf32> to vector<2x128xf32>
    %171 = arith.mulf %169, %170 : vector<2x128xf32>
    %172 = arith.mulf %156, %158 : vector<2x1xf32>
    %cst_49 = arith.constant 0.000000e+00 : f32
    %173 = vector.broadcast %cst_49 : f32 to vector<2x1xf32>
    %174 = arith.subf %173, %172 : vector<2x1xf32>
    %c4_i32_50 = arith.constant 4 : i32
    %175 = tpu.dynamic_rotate %139 by %c4_i32_50 dim 1 : vector<2x128xf32>, i32 -> vector<2x128xf32>
    %c124_i32 = arith.constant 124 : i32
    %176 = tpu.dynamic_rotate %139 by %c124_i32 dim 1 : vector<2x128xf32>, i32 -> vector<2x128xf32>
    %177 = vector.shape_cast %73 : vector<1x128xi1> to vector<1x128xi1>
    %178 = vector.broadcast %177 : vector<1x128xi1> to vector<2x128xi1>
    %179 = arith.select %178, %175, %176 : vector<2x128xi1>, vector<2x128xf32>
    %c4_i32_51 = arith.constant 4 : i32
    %180 = tpu.dynamic_rotate %152 by %c4_i32_51 dim 1 : vector<2x128xf32>, i32 -> vector<2x128xf32>
    %c124_i32_52 = arith.constant 124 : i32
    %181 = tpu.dynamic_rotate %152 by %c124_i32_52 dim 1 : vector<2x128xf32>, i32 -> vector<2x128xf32>
    %182 = vector.shape_cast %73 : vector<1x128xi1> to vector<1x128xi1>
    %183 = vector.broadcast %182 : vector<1x128xi1> to vector<2x128xi1>
    %184 = arith.select %183, %180, %181 : vector<2x128xi1>, vector<2x128xf32>
    %185 = vector.broadcast %163 : vector<2x1xf32> to vector<2x128xf32>
    %186 = arith.mulf %185, %139 : vector<2x128xf32>
    %187 = arith.mulf %167, %152 : vector<2x128xf32>
    %188 = arith.subf %186, %187 : vector<2x128xf32>
    %189 = arith.mulf %171, %179 : vector<2x128xf32>
    %190 = arith.addf %188, %189 : vector<2x128xf32>
    %191 = vector.broadcast %174 : vector<2x1xf32> to vector<2x128xf32>
    %192 = arith.mulf %191, %184 : vector<2x128xf32>
    %193 = arith.subf %190, %192 : vector<2x128xf32>
    %194 = vector.broadcast %163 : vector<2x1xf32> to vector<2x128xf32>
    %195 = arith.mulf %194, %152 : vector<2x128xf32>
    %196 = arith.mulf %167, %139 : vector<2x128xf32>
    %197 = arith.addf %195, %196 : vector<2x128xf32>
    %198 = arith.mulf %171, %184 : vector<2x128xf32>
    %199 = arith.addf %197, %198 : vector<2x128xf32>
    %200 = vector.broadcast %174 : vector<2x1xf32> to vector<2x128xf32>
    %201 = arith.mulf %200, %179 : vector<2x128xf32>
    %202 = arith.addf %199, %201 : vector<2x128xf32>
    %203 = vector.extract_strided_slice %50 {offsets = [0, 6], sizes = [2, 1], strides = [1, 1]} : vector<2x12xf32> to vector<2x1xf32>
    %204 = vector.extract_strided_slice %51 {offsets = [0, 6], sizes = [2, 1], strides = [1, 1]} : vector<2x12xf32> to vector<2x1xf32>
    %205 = vector.extract_strided_slice %50 {offsets = [0, 7], sizes = [2, 1], strides = [1, 1]} : vector<2x12xf32> to vector<2x1xf32>
    %206 = vector.extract_strided_slice %51 {offsets = [0, 7], sizes = [2, 1], strides = [1, 1]} : vector<2x12xf32> to vector<2x1xf32>
    %207 = vector.extract_strided_slice %50 {offsets = [0, 8], sizes = [2, 1], strides = [1, 1]} : vector<2x12xf32> to vector<2x1xf32>
    %208 = vector.extract_strided_slice %51 {offsets = [0, 8], sizes = [2, 1], strides = [1, 1]} : vector<2x12xf32> to vector<2x1xf32>
    %cst_53 = arith.constant 2.000000e+00 : f32
    %209 = vector.broadcast %cst_53 : f32 to vector<1x128xf32>
    %210 = arith.mulf %209, %78 : vector<1x128xf32>
    %cst_54 = arith.constant 1.000000e+00 : f32
    %211 = vector.broadcast %cst_54 : f32 to vector<1x128xf32>
    %212 = arith.subf %210, %211 : vector<1x128xf32>
    %213 = arith.mulf %203, %207 : vector<2x1xf32>
    %214 = arith.mulf %204, %207 : vector<2x1xf32>
    %215 = vector.broadcast %214 : vector<2x1xf32> to vector<2x128xf32>
    %216 = vector.broadcast %212 : vector<1x128xf32> to vector<2x128xf32>
    %217 = arith.mulf %215, %216 : vector<2x128xf32>
    %218 = arith.mulf %205, %208 : vector<2x1xf32>
    %219 = vector.broadcast %218 : vector<2x1xf32> to vector<2x128xf32>
    %220 = vector.broadcast %212 : vector<1x128xf32> to vector<2x128xf32>
    %221 = arith.mulf %219, %220 : vector<2x128xf32>
    %222 = arith.mulf %206, %208 : vector<2x1xf32>
    %cst_55 = arith.constant 0.000000e+00 : f32
    %223 = vector.broadcast %cst_55 : f32 to vector<2x1xf32>
    %224 = arith.subf %223, %222 : vector<2x1xf32>
    %c2_i32_56 = arith.constant 2 : i32
    %225 = tpu.dynamic_rotate %193 by %c2_i32_56 dim 1 : vector<2x128xf32>, i32 -> vector<2x128xf32>
    %c126_i32 = arith.constant 126 : i32
    %226 = tpu.dynamic_rotate %193 by %c126_i32 dim 1 : vector<2x128xf32>, i32 -> vector<2x128xf32>
    %227 = vector.shape_cast %83 : vector<1x128xi1> to vector<1x128xi1>
    %228 = vector.broadcast %227 : vector<1x128xi1> to vector<2x128xi1>
    %229 = arith.select %228, %225, %226 : vector<2x128xi1>, vector<2x128xf32>
    %c2_i32_57 = arith.constant 2 : i32
    %230 = tpu.dynamic_rotate %202 by %c2_i32_57 dim 1 : vector<2x128xf32>, i32 -> vector<2x128xf32>
    %c126_i32_58 = arith.constant 126 : i32
    %231 = tpu.dynamic_rotate %202 by %c126_i32_58 dim 1 : vector<2x128xf32>, i32 -> vector<2x128xf32>
    %232 = vector.shape_cast %83 : vector<1x128xi1> to vector<1x128xi1>
    %233 = vector.broadcast %232 : vector<1x128xi1> to vector<2x128xi1>
    %234 = arith.select %233, %230, %231 : vector<2x128xi1>, vector<2x128xf32>
    %235 = vector.broadcast %213 : vector<2x1xf32> to vector<2x128xf32>
    %236 = arith.mulf %235, %193 : vector<2x128xf32>
    %237 = arith.mulf %217, %202 : vector<2x128xf32>
    %238 = arith.subf %236, %237 : vector<2x128xf32>
    %239 = arith.mulf %221, %229 : vector<2x128xf32>
    %240 = arith.addf %238, %239 : vector<2x128xf32>
    %241 = vector.broadcast %224 : vector<2x1xf32> to vector<2x128xf32>
    %242 = arith.mulf %241, %234 : vector<2x128xf32>
    %243 = arith.subf %240, %242 : vector<2x128xf32>
    %244 = vector.broadcast %213 : vector<2x1xf32> to vector<2x128xf32>
    %245 = arith.mulf %244, %202 : vector<2x128xf32>
    %246 = arith.mulf %217, %193 : vector<2x128xf32>
    %247 = arith.addf %245, %246 : vector<2x128xf32>
    %248 = arith.mulf %221, %234 : vector<2x128xf32>
    %249 = arith.addf %247, %248 : vector<2x128xf32>
    %250 = vector.broadcast %224 : vector<2x1xf32> to vector<2x128xf32>
    %251 = arith.mulf %250, %229 : vector<2x128xf32>
    %252 = arith.addf %249, %251 : vector<2x128xf32>
    %253 = vector.extract_strided_slice %50 {offsets = [0, 9], sizes = [2, 1], strides = [1, 1]} : vector<2x12xf32> to vector<2x1xf32>
    %254 = vector.extract_strided_slice %51 {offsets = [0, 9], sizes = [2, 1], strides = [1, 1]} : vector<2x12xf32> to vector<2x1xf32>
    %255 = vector.extract_strided_slice %50 {offsets = [0, 10], sizes = [2, 1], strides = [1, 1]} : vector<2x12xf32> to vector<2x1xf32>
    %256 = vector.extract_strided_slice %51 {offsets = [0, 10], sizes = [2, 1], strides = [1, 1]} : vector<2x12xf32> to vector<2x1xf32>
    %257 = vector.extract_strided_slice %50 {offsets = [0, 11], sizes = [2, 1], strides = [1, 1]} : vector<2x12xf32> to vector<2x1xf32>
    %258 = vector.extract_strided_slice %51 {offsets = [0, 11], sizes = [2, 1], strides = [1, 1]} : vector<2x12xf32> to vector<2x1xf32>
    %cst_59 = arith.constant 2.000000e+00 : f32
    %259 = vector.broadcast %cst_59 : f32 to vector<1x128xf32>
    %260 = arith.mulf %259, %88 : vector<1x128xf32>
    %cst_60 = arith.constant 1.000000e+00 : f32
    %261 = vector.broadcast %cst_60 : f32 to vector<1x128xf32>
    %262 = arith.subf %260, %261 : vector<1x128xf32>
    %263 = arith.mulf %253, %257 : vector<2x1xf32>
    %264 = arith.mulf %254, %257 : vector<2x1xf32>
    %265 = vector.broadcast %264 : vector<2x1xf32> to vector<2x128xf32>
    %266 = vector.broadcast %262 : vector<1x128xf32> to vector<2x128xf32>
    %267 = arith.mulf %265, %266 : vector<2x128xf32>
    %268 = arith.mulf %255, %258 : vector<2x1xf32>
    %269 = vector.broadcast %268 : vector<2x1xf32> to vector<2x128xf32>
    %270 = vector.broadcast %262 : vector<1x128xf32> to vector<2x128xf32>
    %271 = arith.mulf %269, %270 : vector<2x128xf32>
    %272 = arith.mulf %256, %258 : vector<2x1xf32>
    %cst_61 = arith.constant 0.000000e+00 : f32
    %273 = vector.broadcast %cst_61 : f32 to vector<2x1xf32>
    %274 = arith.subf %273, %272 : vector<2x1xf32>
    %c1_i32_62 = arith.constant 1 : i32
    %275 = tpu.dynamic_rotate %243 by %c1_i32_62 dim 1 : vector<2x128xf32>, i32 -> vector<2x128xf32>
    %c127_i32 = arith.constant 127 : i32
    %276 = tpu.dynamic_rotate %243 by %c127_i32 dim 1 : vector<2x128xf32>, i32 -> vector<2x128xf32>
    %277 = vector.shape_cast %93 : vector<1x128xi1> to vector<1x128xi1>
    %278 = vector.broadcast %277 : vector<1x128xi1> to vector<2x128xi1>
    %279 = arith.select %278, %275, %276 : vector<2x128xi1>, vector<2x128xf32>
    %c1_i32_63 = arith.constant 1 : i32
    %280 = tpu.dynamic_rotate %252 by %c1_i32_63 dim 1 : vector<2x128xf32>, i32 -> vector<2x128xf32>
    %c127_i32_64 = arith.constant 127 : i32
    %281 = tpu.dynamic_rotate %252 by %c127_i32_64 dim 1 : vector<2x128xf32>, i32 -> vector<2x128xf32>
    %282 = vector.shape_cast %93 : vector<1x128xi1> to vector<1x128xi1>
    %283 = vector.broadcast %282 : vector<1x128xi1> to vector<2x128xi1>
    %284 = arith.select %283, %280, %281 : vector<2x128xi1>, vector<2x128xf32>
    %285 = vector.broadcast %263 : vector<2x1xf32> to vector<2x128xf32>
    %286 = arith.mulf %285, %243 : vector<2x128xf32>
    %287 = arith.mulf %267, %252 : vector<2x128xf32>
    %288 = arith.subf %286, %287 : vector<2x128xf32>
    %289 = arith.mulf %271, %279 : vector<2x128xf32>
    %290 = arith.addf %288, %289 : vector<2x128xf32>
    %291 = vector.broadcast %274 : vector<2x1xf32> to vector<2x128xf32>
    %292 = arith.mulf %291, %284 : vector<2x128xf32>
    %293 = arith.subf %290, %292 : vector<2x128xf32>
    %294 = vector.broadcast %263 : vector<2x1xf32> to vector<2x128xf32>
    %295 = arith.mulf %294, %252 : vector<2x128xf32>
    %296 = arith.mulf %267, %243 : vector<2x128xf32>
    %297 = arith.addf %295, %296 : vector<2x128xf32>
    %298 = arith.mulf %271, %284 : vector<2x128xf32>
    %299 = arith.addf %297, %298 : vector<2x128xf32>
    %300 = vector.broadcast %274 : vector<2x1xf32> to vector<2x128xf32>
    %301 = arith.mulf %300, %279 : vector<2x128xf32>
    %302 = arith.addf %299, %301 : vector<2x128xf32>
    %c0_65 = arith.constant 0 : index
    %c0_66 = arith.constant 0 : index
    %303 = vector.load %arg11[%c0_65, %c0_66] : memref<128x128xf32, #tpu.memory_space<vmem>>, vector<128x128xf32>
    %c0_67 = arith.constant 0 : index
    %c0_68 = arith.constant 0 : index
    %304 = vector.load %arg12[%c0_67, %c0_68] : memref<128x128xf32, #tpu.memory_space<vmem>>, vector<128x128xf32>
    %cst_69 = arith.constant dense<0.000000e+00> : vector<2x128xf32>
    %305 = tpu.matmul %293, %303, %cst_69 {dimension_numbers = #tpu.dot_dimension_numbers<[1], [0], [0], [1], [0, 0, 1, 1], [], []>} : vector<2x128xf32>, vector<128x128xf32>, vector<2x128xf32> -> vector<2x128xf32>
    %cst_70 = arith.constant dense<0.000000e+00> : vector<2x128xf32>
    %306 = tpu.matmul %302, %304, %cst_70 {dimension_numbers = #tpu.dot_dimension_numbers<[1], [0], [0], [1], [0, 0, 1, 1], [], []>} : vector<2x128xf32>, vector<128x128xf32>, vector<2x128xf32> -> vector<2x128xf32>
    %307 = arith.subf %305, %306 : vector<2x128xf32>
    %cst_71 = arith.constant dense<0.000000e+00> : vector<2x128xf32>
    %308 = tpu.matmul %293, %304, %cst_71 {dimension_numbers = #tpu.dot_dimension_numbers<[1], [0], [0], [1], [0, 0, 1, 1], [], []>} : vector<2x128xf32>, vector<128x128xf32>, vector<2x128xf32> -> vector<2x128xf32>
    %cst_72 = arith.constant dense<0.000000e+00> : vector<2x128xf32>
    %309 = tpu.matmul %302, %303, %cst_72 {dimension_numbers = #tpu.dot_dimension_numbers<[1], [0], [0], [1], [0, 0, 1, 1], [], []>} : vector<2x128xf32>, vector<128x128xf32>, vector<2x128xf32> -> vector<2x128xf32>
    %310 = arith.addf %308, %309 : vector<2x128xf32>
    %311 = vector.extract_strided_slice %50 {offsets = [0, 6], sizes = [2, 1], strides = [1, 1]} : vector<2x12xf32> to vector<2x1xf32>
    %312 = vector.extract_strided_slice %51 {offsets = [0, 6], sizes = [2, 1], strides = [1, 1]} : vector<2x12xf32> to vector<2x1xf32>
    %313 = vector.extract_strided_slice %50 {offsets = [0, 7], sizes = [2, 1], strides = [1, 1]} : vector<2x12xf32> to vector<2x1xf32>
    %314 = vector.extract_strided_slice %51 {offsets = [0, 7], sizes = [2, 1], strides = [1, 1]} : vector<2x12xf32> to vector<2x1xf32>
    %315 = vector.extract_strided_slice %50 {offsets = [0, 8], sizes = [2, 1], strides = [1, 1]} : vector<2x12xf32> to vector<2x1xf32>
    %316 = vector.extract_strided_slice %51 {offsets = [0, 8], sizes = [2, 1], strides = [1, 1]} : vector<2x12xf32> to vector<2x1xf32>
    %cst_73 = arith.constant 2.000000e+00 : f32
    %317 = vector.broadcast %cst_73 : f32 to vector<1x128xf32>
    %318 = arith.mulf %317, %78 : vector<1x128xf32>
    %cst_74 = arith.constant 1.000000e+00 : f32
    %319 = vector.broadcast %cst_74 : f32 to vector<1x128xf32>
    %320 = arith.subf %318, %319 : vector<1x128xf32>
    %321 = arith.mulf %311, %315 : vector<2x1xf32>
    %322 = arith.mulf %312, %315 : vector<2x1xf32>
    %323 = vector.broadcast %322 : vector<2x1xf32> to vector<2x128xf32>
    %324 = vector.broadcast %320 : vector<1x128xf32> to vector<2x128xf32>
    %325 = arith.mulf %323, %324 : vector<2x128xf32>
    %326 = arith.mulf %313, %316 : vector<2x1xf32>
    %327 = vector.broadcast %326 : vector<2x1xf32> to vector<2x128xf32>
    %328 = vector.broadcast %320 : vector<1x128xf32> to vector<2x128xf32>
    %329 = arith.mulf %327, %328 : vector<2x128xf32>
    %330 = arith.mulf %314, %316 : vector<2x1xf32>
    %cst_75 = arith.constant 0.000000e+00 : f32
    %331 = vector.broadcast %cst_75 : f32 to vector<2x1xf32>
    %332 = arith.subf %331, %330 : vector<2x1xf32>
    %c2_i32_76 = arith.constant 2 : i32
    %333 = tpu.dynamic_rotate %307 by %c2_i32_76 dim 1 : vector<2x128xf32>, i32 -> vector<2x128xf32>
    %c126_i32_77 = arith.constant 126 : i32
    %334 = tpu.dynamic_rotate %307 by %c126_i32_77 dim 1 : vector<2x128xf32>, i32 -> vector<2x128xf32>
    %335 = vector.shape_cast %83 : vector<1x128xi1> to vector<1x128xi1>
    %336 = vector.broadcast %335 : vector<1x128xi1> to vector<2x128xi1>
    %337 = arith.select %336, %333, %334 : vector<2x128xi1>, vector<2x128xf32>
    %c2_i32_78 = arith.constant 2 : i32
    %338 = tpu.dynamic_rotate %310 by %c2_i32_78 dim 1 : vector<2x128xf32>, i32 -> vector<2x128xf32>
    %c126_i32_79 = arith.constant 126 : i32
    %339 = tpu.dynamic_rotate %310 by %c126_i32_79 dim 1 : vector<2x128xf32>, i32 -> vector<2x128xf32>
    %340 = vector.shape_cast %83 : vector<1x128xi1> to vector<1x128xi1>
    %341 = vector.broadcast %340 : vector<1x128xi1> to vector<2x128xi1>
    %342 = arith.select %341, %338, %339 : vector<2x128xi1>, vector<2x128xf32>
    %343 = vector.broadcast %321 : vector<2x1xf32> to vector<2x128xf32>
    %344 = arith.mulf %343, %307 : vector<2x128xf32>
    %345 = arith.mulf %325, %310 : vector<2x128xf32>
    %346 = arith.subf %344, %345 : vector<2x128xf32>
    %347 = arith.mulf %329, %337 : vector<2x128xf32>
    %348 = arith.addf %346, %347 : vector<2x128xf32>
    %349 = vector.broadcast %332 : vector<2x1xf32> to vector<2x128xf32>
    %350 = arith.mulf %349, %342 : vector<2x128xf32>
    %351 = arith.subf %348, %350 : vector<2x128xf32>
    %352 = vector.broadcast %321 : vector<2x1xf32> to vector<2x128xf32>
    %353 = arith.mulf %352, %310 : vector<2x128xf32>
    %354 = arith.mulf %325, %307 : vector<2x128xf32>
    %355 = arith.addf %353, %354 : vector<2x128xf32>
    %356 = arith.mulf %329, %342 : vector<2x128xf32>
    %357 = arith.addf %355, %356 : vector<2x128xf32>
    %358 = vector.broadcast %332 : vector<2x1xf32> to vector<2x128xf32>
    %359 = arith.mulf %358, %337 : vector<2x128xf32>
    %360 = arith.addf %357, %359 : vector<2x128xf32>
    %361 = arith.mulf %351, %351 : vector<2x128xf32>
    %362 = arith.mulf %360, %360 : vector<2x128xf32>
    %363 = arith.addf %361, %362 : vector<2x128xf32>
    %c0_80 = arith.constant 0 : index
    %c0_81 = arith.constant 0 : index
    %364 = vector.load %arg13[%c0_80, %c0_81] : memref<1x128xf32, #tpu.memory_space<vmem>>, vector<1x128xf32>
    %365 = vector.broadcast %364 : vector<1x128xf32> to vector<2x128xf32>
    %366 = arith.mulf %363, %365 : vector<2x128xf32>
    %cst_82 = arith.constant dense<0.000000e+00> : vector<2xf32>
    %367 = vector.multi_reduction <add>, %366, %cst_82 [1] : vector<2x128xf32> to vector<2xf32>
    %368 = vector.shape_cast %367 : vector<2xf32> to vector<2x1xf32>
    %369 = math.tanh %368 : vector<2x1xf32>
    %cst_83 = arith.constant 3.000000e+00 : f32
    %370 = vector.broadcast %cst_83 : f32 to vector<2x1xf32>
    %371 = arith.mulf %369, %370 : vector<2x1xf32>
    %c0_84 = arith.constant 0 : index
    %c0_85 = arith.constant 0 : index
    %372 = vector.load %arg14[%c0_84, %c0_85] : memref<2x1xf32, #tpu.memory_space<vmem>>, vector<2x1xf32>
    tpu.vector_store %arg14[%c0_84, %c0_85], %371 {strides = array<i32>} : memref<2x1xf32, #tpu.memory_space<vmem>>, vector<2x1xf32>,
    return
  }
  func.func @transform_0(%arg0: i32) -> (i32, i32) {
    %c0_i32 = arith.constant 0 : i32
    %c0_i32_0 = arith.constant 0 : i32
    return %arg0, %c0_i32 : i32, i32
  }
  func.func @transform_1(%arg0: i32) -> (i32, i32) {
    %c0_i32 = arith.constant 0 : i32
    %c0_i32_0 = arith.constant 0 : i32
    return %arg0, %c0_i32 : i32, i32
  }
  func.func @transform_2(%arg0: i32) -> (i32, i32) {
    %c0_i32 = arith.constant 0 : i32
    %c0_i32_0 = arith.constant 0 : i32
    return %arg0, %c0_i32 : i32, i32
  }
  func.func @transform_3(%arg0: i32) -> (i32, i32) {
    %c0_i32 = arith.constant 0 : i32
    %c0_i32_0 = arith.constant 0 : i32
    %c0_i32_1 = arith.constant 0 : i32
    return %c0_i32, %c0_i32_0 : i32, i32
  }
  func.func @transform_4(%arg0: i32) -> (i32, i32) {
    %c0_i32 = arith.constant 0 : i32
    %c0_i32_0 = arith.constant 0 : i32
    %c0_i32_1 = arith.constant 0 : i32
    return %c0_i32, %c0_i32_0 : i32, i32
  }
  func.func @transform_5(%arg0: i32) -> (i32, i32) {
    %c0_i32 = arith.constant 0 : i32
    %c0_i32_0 = arith.constant 0 : i32
    %c0_i32_1 = arith.constant 0 : i32
    return %c0_i32, %c0_i32_0 : i32, i32
  }
  func.func @transform_6(%arg0: i32) -> (i32, i32) {
    %c0_i32 = arith.constant 0 : i32
    %c0_i32_0 = arith.constant 0 : i32
    %c0_i32_1 = arith.constant 0 : i32
    return %c0_i32, %c0_i32_0 : i32, i32
  }
  func.func @transform_7(%arg0: i32) -> (i32, i32) {
    %c0_i32 = arith.constant 0 : i32
    %c0_i32_0 = arith.constant 0 : i32
    %c0_i32_1 = arith.constant 0 : i32
    return %c0_i32, %c0_i32_0 : i32, i32
  }
  func.func @transform_8(%arg0: i32) -> (i32, i32) {
    %c0_i32 = arith.constant 0 : i32
    %c0_i32_0 = arith.constant 0 : i32
    %c0_i32_1 = arith.constant 0 : i32
    return %c0_i32, %c0_i32_0 : i32, i32
  }
  func.func @transform_9(%arg0: i32) -> (i32, i32) {
    %c0_i32 = arith.constant 0 : i32
    %c0_i32_0 = arith.constant 0 : i32
    %c0_i32_1 = arith.constant 0 : i32
    return %c0_i32, %c0_i32_0 : i32, i32
  }
  func.func @transform_10(%arg0: i32) -> (i32, i32) {
    %c0_i32 = arith.constant 0 : i32
    %c0_i32_0 = arith.constant 0 : i32
    %c0_i32_1 = arith.constant 0 : i32
    return %c0_i32, %c0_i32_0 : i32, i32
  }
  func.func @transform_11(%arg0: i32) -> (i32, i32) {
    %c0_i32 = arith.constant 0 : i32
    %c0_i32_0 = arith.constant 0 : i32
    %c0_i32_1 = arith.constant 0 : i32
    return %c0_i32, %c0_i32_0 : i32, i32
  }
  func.func @transform_12(%arg0: i32) -> (i32, i32) {
    %c0_i32 = arith.constant 0 : i32
    %c0_i32_0 = arith.constant 0 : i32
    %c0_i32_1 = arith.constant 0 : i32
    return %c0_i32, %c0_i32_0 : i32, i32
  }
  func.func @transform_13(%arg0: i32) -> (i32, i32) {
    %c0_i32 = arith.constant 0 : i32
    %c0_i32_0 = arith.constant 0 : i32
    return %arg0, %c0_i32 : i32, i32
  }
}

</mosaic_0001>

<bundles_post_ra>
// kernel: qnet_forward.1
= control target key start
LH: loop header
LB: loop body
LE: loop exit
PB: predicated region body
PF: predicated region fallthrough
CT: control target
= control target key end

     0   :  { %v2410_v0 = vmov 0.0|0.0   ;;  %vm2411_vm0 = vmmov 0   ;;  %v2412_v8 = vmov 0.0   ;;  %vm131_vm1 = vcmask 326656   ;;  %s2416_s16 = smov 24   ;;  %s2418_s17 = smov 36   ;;  %s2988_s4 = inlined_call_operand.vmem [shape: f32[48,96], index: 4, kind: input, shape index: {}]   ;;  %s2989_s3 = inlined_call_operand.vmem [shape: f32[40,96], index: 3, kind: input, shape index: {}]   ;;  %s2990_s5 = inlined_call_operand.vmem [shape: f32[56,96], index: 5, kind: input, shape index: {}]   ;;  %s2991_s0 = inlined_call_operand.vmem [shape: f32[2,40], index: 0, kind: input, shape index: {}]   ;;  %s2992_s1 = inlined_call_operand.vmem [shape: f32[2,48], index: 1, kind: input, shape index: {}]   ;;  %s2993_s2 = inlined_call_operand.vmem [shape: f32[2,56], index: 2, kind: input, shape index: {}]   ;;  %s2994_s7 = inlined_call_operand.vmem [shape: f32[12,12], index: 7, kind: input, shape index: {}]   ;;  %s2995_s6 = inlined_call_operand.vmem [shape: f32[1,96], index: 6, kind: input, shape index: {}]   ;;  %s2996_s8 = inlined_call_operand.vmem [shape: f32[12,12], index: 8, kind: input, shape index: {}]   ;;  %s2997_s9 = inlined_call_operand.vmem [shape: f32[1,12], index: 9, kind: input, shape index: {}]   ;;  %s2998_s10 = inlined_call_operand.vmem [shape: f32[128,128], index: 10, kind: input, shape index: {}]   ;;  %s2999_s11 = inlined_call_operand.vmem [shape: f32[128,128], index: 11, kind: input, shape index: {}]   ;;  %s3000_s12 = inlined_call_operand.vmem [shape: f32[1,128], index: 12, kind: input, shape index: {}]   ;;  %s3001_s13 = inlined_call_operand.vmem [shape: f32[2,1], index: 13, kind: output, shape index: {}]  }
   0x1   :  { %2168 = vmatprep.subr.bf16.mxu0 %v2410_v0  ;;  %2177 = vmatprep.subr.bf16.mxu1 %v2410_v0  ;;  %v51_v1 = vld [vmem:[%s2988_s4] sm:$0xff]  ;;  %v52_v2 = vld [vmem:[%s2988_s4 + $0x8] sm:$0xff]  ;;  %v53_v6 = vld [vmem:[%s2988_s4 + $0x10] sm:$0xff]  ;;  %vm57_vm2 = vcmask 392192   ;;  %vm213_vm3 = vcmask 457728   ;;  %vm303_vm4 = vcmask 1043456  }
   0x2   :  { %v45_v3 = vld [vmem:[%s2989_s3] sm:$0xff]  ;;  %v2169_v4 = vpack.c.bf16 %v52_v2, %v51_v1  ;;  %v46_v5 = vld [vmem:[%s2989_s3 + $0x8] sm:$0xff]  ;;  %v54_v7 = vld [vmem:[%s2988_s4 + $0x18] sm:$0xff]  ;;  %1952 = vmatprep.mubr.msk.f32.mxu1 %vm2411_vm0, %v2412_v8  ;;  %1939 = vmatprep.mubr.msk.f32.mxu0 %vm2411_vm0, %v2412_v8  ;;  %vm2413_vm5 = vmmov 1   ;;  %vm299_vm7 = vcmask 97280   ;;  %s2419_s18 = smov 92  }
   0x3   :  { %v2178_v9 = vpack.c.bf16 %v46_v5, %v45_v3  ;;  %v47_v10 = vld [vmem:[%s2989_s3 + $0x10] sm:$0xff]  ;;  %v48_v11 = vld [vmem:[%s2989_s3 + $0x18] sm:$0xff]  ;;  %v2172_v12 = vpack.c.bf16 %v54_v7, %v53_v6  ;;  %v55_v14 = vld [vmem:[%s2988_s4 + $0x20] sm:$0xff]  ;;  %s2420_s19 = smov 48   ;;  %s2421_s20 = smov 80  }
   0x4   :  { %2170 = vmatpush3.bf16.msra.mxu0 %v2169_v4  ;;  %v2181_v13 = vpack.c.bf16 %v48_v11, %v47_v10  ;;  %v56_v15 = vld [vmem:[%s2988_s4 + $0x28] sm:$0xff]  ;;  %v206_v17 = vld [vmem:[%s2990_s5] sm:$0xff]  ;;  %v208_v23 = vld [vmem:[%s2990_s5 + $0x10] sm:$0xff]  ;;  %s2417_s4 = smov 104   ;;  %s2422_s21 = smov 60  }
   0x5   :  { %2179 = vmatpush3.bf16.msra.mxu1 %v2178_v9  ;;  %2171 = vmatprep.subr.bf16.mxu0 %v2410_v0  ;;  %v2175_v16 = vpack.c.bf16 %v56_v15, %v55_v14  ;;  %v207_v18 = vld [vmem:[%s2990_s5 + $0x8] sm:$0xff]  ;;  %v49_v19 = vld [vmem:[%s2989_s3 + $0x20] sm:$0xff]  ;;  %v209_v24 = vld [vmem:[%s2990_s5 + $0x18] sm:$0xff]  ;;  %s2423_s22 = smov 68   ;;  %s2424_s23 = smov 72  }
   0x6   :  { %2180 = vmatprep.subr.bf16.mxu1 %v2410_v0  ;;  %v44_v20 = vld [vmem:[%s2991_s0] sm:$0x3]  ;;  %v2184_v21 = vpack.c.bf16 %v207_v18, %v206_v17  ;;  %v2187_v25 = vpack.c.bf16 %v209_v24, %v208_v23  ;;  %v211_v27 = vld [vmem:[%s2990_s5 + $0x28] sm:$0xff]  ;;  %v212_v29 = vld [vmem:[%s2990_s5 + $0x30] sm:$0xff]  ;;  %s2425_s0 = smov 56   ;;  %s2427_s27 = smov 44  }
   0x7   :  { %v50_v22 = vld [vmem:[%s2992_s1] sm:$0x3]  ;;  %v297_v32 = vld [vmem:[%s2994_s7 + $0x8] sm:$0xf]  ;;  %vm2611_vm6 = vmpackc.low %vm303_vm4, %vm2413_vm5  ;;  %s2426_s1 = smov 84   ;;  %s2437_s29 = smov 126  }
   0x8   :  { %2173 = vmatpush3.bf16.msra.mxu0 %v2172_v12  ;;  %v210_v26 = vld [vmem:[%s2990_s5 + $0x20] sm:$0xff]  ;;  %v870_v23 = vld [vmem:[%s2996_s8 + $0x8] sm:$0xf]  ;;  %s2438_s30 = smov 8   ;;  %s2439_s14 = smov 120  }
   0x9   :  { %2182 = vmatpush3.bf16.msra.mxu1 %v2181_v13  ;;  %2174 = vmatprep.subr.bf16.mxu0 %v2410_v0  ;;  %v2190_v28 = vpack.c.bf16 %v211_v27, %v210_v26  ;;  %v205_v30 = vld [vmem:[%s2993_s2] sm:$0x3]  ;;  %s2442_s15 = smov 4   ;;  %s2445_s2 = smov 124  }
   0xa   :  { %1950 = vmatprep.subr.mxu1 %v2412_v8  ;;  %v296_v31 = vld [vmem:[%s2994_s7] sm:$0xff]  ;;  %s2415_s7 = smov 116   ;;  %s2446_s5 = smov 2  }
   0xb   :  { %v2615_v34 = vpack.c.bf16 %v297_v32, %v296_v31  ;;  %v1782_v41 = vld [vmem:[%s2995_s6] ss:$0 sm:$0xff]  ;;  %s2414_s6 = smov 12  }
   0xc   :  { %2176 = vmatpush3.bf16.msra.mxu0 %v2175_v16 }
   0xd   :  { %1951 = vmatpush3.msra.mxu1 %v49_v19  ;;  %2192 = vmatprep.subr.bf16.mxu0 %v2410_v0 }
   0xe   :  { %1953 = vmatmul.mubr.msk.f32.vlgmr.msra.gmra.mrb[0].mxu1 %vm131_vm1, %v44_v20  ;;  %2183 = vmatprep.subr.bf16.mxu1 %v2410_v0 }
   0xf   :  { %2185 = vmatpush3.bf16.msra.mxu1 %v2184_v21  ;;  %1940 = vmatmul.mubr.msk.f32.vlgmr.msra.gmra.mrb[0].mxu0 %vm57_vm2, %v50_v22  ;;  %v869_v22 = vld [vmem:[%s2996_s8] sm:$0xff] }
  0x10   :  { %2186 = vmatprep.subr.bf16.mxu1 %v2410_v0  ;;  %1969 = vmatprep.mubr.msk.f32.mxu1 %vm2411_vm0, %v2412_v8  ;;  %v2221_v24 = vpack.c.bf16 %v870_v23, %v869_v22 }
  0x11   :  { %1976 = vmatprep.mubr.msk.f32.mxu0 %vm2411_vm0, %v2412_v8  ;;  %2195 = vmatpush3.bf16.msk.msra.mxu0 %vm2611_vm6, %v2615_v34 }
  0x12   :  { %2196 = vmatprep.subr.bf16.mxu0 %v2410_v0 }
  0x13   :  { %2188 = vmatpush3.bf16.msra.mxu1 %v2187_v25 }
  0x14   :  { %2189 = vmatprep.subr.bf16.mxu1 %v2410_v0 }
  0x17   :  { %2191 = vmatpush3.bf16.msra.mxu1 %v2190_v28 }
  0x18   :  { %1967 = vmatprep.subr.mxu1 %v2412_v8 }
  0x1b   :  { %1968 = vmatpush3.msra.mxu1 %v212_v29  ;;  %v1797_v29 = vld [vmem:[%s2997_s9] ss:$0 sm:$0xff]  ;;  %s2436_s9 = smov 127  }
  0x1c   :  { %1970 = vmatmul.mubr.msk.f32.vlgmr.msra.gmra.mrb[2].mxu1 %vm213_vm3, %v205_v30  ;;  %2208 = vmatprep.subr.bf16.mxu1 %v2410_v0 }
  0x1d   :  { %2004 = vmatprep.mubr.msk.f32.mxu1 %vm2411_vm0, %v2412_v8  ;;  %2211 = vmatpush3.bf16.msk.msra.mxu1 %vm2611_vm6, %v2615_v34 }
  0x1e   :  { %2216 = vmatprep.subr.bf16.mxu1 %v2410_v0 }
  0xe1   :  { %v201_v35 = vpop.f32.mrb[0].mxu1 }
  0xe2   :  { %v1954_v36 = vpop.f32.mrb[1].mxu1  ;;  %v127_v37 = vpop.f32.mrb[0].mxu0 }
  0xe3   :  { %v202_v38 = vadd.f32 %v201_v35, %v127_v37  ;;  %v1941_v39 = vpop.f32.mrb[1].mxu0 }
  0xef   :  { %v283_v40 = vpop.f32.mrb[2].mxu1 }
  0xf0   :  { %v287_v42 = vadd.f32 %v283_v40, %v202_v38  ;;  %v1971_v43 = vpop.f32.mrb[3].mxu1 }
  0xf1   :  { %v2428_v43 = vmov 683565275  }
  0xf2   :  { %v2628_v44 = vadd.f32 %v1782_v41, %v287_v42 }
  0xf4   :  { %2388 = vtanh.f32 %v2628_v44 }
  0xfe   :  { %v2389_v45 = vpop.eup %2388 }
  0xff   :  { %1977 = vmatmul.mubr.msk.f32.vlgmr.msra.gmra.mrb[2].mxu0 %vm299_vm7, %v2389_v45  ;;  %v2429_v45 = vmov 2475754826  }
 0x100   :  { %2199 = vmatpush3.bf16.msk.msra.mxu0 %vm2611_vm6, %v2615_v34  ;;  %1983 = vmatprep.mubr.msk.f32.mxu0 %vm2411_vm0, %v2412_v8 }
 0x101   :  { %2200 = vmatprep.subr.bf16.mxu0 %v2410_v0 }
 0x1d2   :  { %v373_v46 = vpop.f32.mrb[2].mxu0 }
 0x1d3   :  { %378 = vrot.lane.b32.xlu0 %v373_v46, %s2414_s6  ;;  %v1978_v47 = vpop.f32.mrb[3].mxu0  ;;  %s2449_s6 = smov 1  }
 0x245   :  { %v379_v48 = vpop.permute.xlu0 %378 }
 0x246   :  { %v381_v49 = vadd.f32 %v379_v48, %v2628_v44  ;;  %v2430_v48 = vmov 2131351028  }
 0x248   :  { %2390 = vtanh.f32 %v381_v49 }
 0x252   :  { %v2391_v50 = vpop.eup %2390 }
 0x253   :  { %384 = vrot.lane.b32.xlu0 %v2391_v50, %s2415_s7 }
 0x2c5   :  { %v385_v51 = vpop.permute.xlu0 %384 }
 0x2c6   :  { %1984 = vmatmul.mubr.msk.f32.vlgmr.msra.gmra.mrb[4].mxu0 %vm299_vm7, %v385_v51  ;;  %v2431_v51 = vmov 2102212464  }
 0x2c7   :  { %2203 = vmatpush3.bf16.msk.msra.mxu0 %vm2611_vm6, %v2615_v34  ;;  %1990 = vmatprep.mubr.msk.f32.mxu0 %vm2411_vm0, %v2412_v8 }
 0x2c8   :  { %2204 = vmatprep.subr.bf16.mxu0 %v2410_v0 }
 0x399   :  { %v454_v52 = vpop.f32.mrb[4].mxu0 }
 0x39a   :  { %459 = vrot.lane.b32.xlu1 %v454_v52, %s2416_s16  ;;  %v1985_v53 = vpop.f32.mrb[5].mxu0 }
 0x40c   :  { %v460_v54 = vpop.permute.xlu1 %459 }
 0x40d   :  { %v462_v55 = vadd.f32 %v460_v54, %v2628_v44  ;;  %v2432_v54 = vmov 920167782  }
 0x40f   :  { %2392 = vtanh.f32 %v462_v55 }
 0x419   :  { %v2393_v56 = vpop.eup %2392 }
 0x41a   :  { %465 = vrot.lane.b32.xlu1 %v2393_v56, %s2417_s4 }
 0x48c   :  { %v466_v57 = vpop.permute.xlu1 %465 }
 0x48d   :  { %1991 = vmatmul.mubr.msk.f32.vlgmr.msra.gmra.mrb[6].mxu0 %vm299_vm7, %v466_v57  ;;  %v2433_v57 = vmov 1326507024  }
 0x48e   :  { %2207 = vmatpush3.bf16.msk.msra.mxu0 %vm2611_vm6, %v2615_v34  ;;  %1997 = vmatprep.mubr.msk.f32.mxu0 %vm2411_vm0, %v2412_v8 }
 0x48f   :  { %2212 = vmatprep.subr.bf16.mxu0 %v2410_v0 }
 0x560   :  { %v535_v58 = vpop.f32.mrb[6].mxu0 }
 0x561   :  { %540 = vrot.lane.b32.xlu0 %v535_v58, %s2418_s17  ;;  %v1992_v59 = vpop.f32.mrb[7].mxu0 }
 0x5d3   :  { %v541_v60 = vpop.permute.xlu0 %540 }
 0x5d4   :  { %v543_v61 = vadd.f32 %v541_v60, %v2628_v44 }
 0x5d6   :  { %2394 = vtanh.f32 %v543_v61 }
 0x5e0   :  { %v2395_v62 = vpop.eup %2394 }
 0x5e1   :  { %546 = vrot.lane.b32.xlu1 %v2395_v62, %s2419_s18 }
 0x653   :  { %v547_v63 = vpop.permute.xlu1 %546 }
 0x654   :  { %1998 = vmatmul.mubr.msk.f32.vlgmr.msra.gmra.mrb[8].mxu0 %vm299_vm7, %v547_v63 }
 0x655   :  { %2215 = vmatpush3.bf16.msk.msra.mxu0 %vm2611_vm6, %v2615_v34  ;;  %2011 = vmatprep.mubr.msk.f32.mxu0 %vm2411_vm0, %v2412_v8 }
 0x656   :  { %2220 = vmatprep.subr.bf16.mxu0 %v2410_v0 }
 0x727   :  { %v616_v1 = vpop.f32.mrb[8].mxu0 }
 0x728   :  { %621 = vrot.lane.b32.xlu0 %v616_v1, %s2420_s19  ;;  %v1999_v2 = vpop.f32.mrb[9].mxu0 }
 0x79a   :  { %v622_v3 = vpop.permute.xlu0 %621 }
 0x79b   :  { %v624_v4 = vadd.f32 %v622_v3, %v2628_v44 }
 0x79d   :  { %2396 = vtanh.f32 %v624_v4 }
 0x7a7   :  { %v2397_v5 = vpop.eup %2396 }
 0x7a8   :  { %627 = vrot.lane.b32.xlu1 %v2397_v5, %s2421_s20 }
 0x81a   :  { %v628_v6 = vpop.permute.xlu1 %627 }
 0x81b   :  { %2005 = vmatmul.mubr.msk.f32.vlgmr.msra.gmra.mrb[4].mxu1 %vm299_vm7, %v628_v6 }
 0x81c   :  { %2219 = vmatpush3.bf16.msk.msra.mxu1 %vm2611_vm6, %v2615_v34  ;;  %2018 = vmatprep.mubr.msk.f32.mxu1 %vm2411_vm0, %v2412_v8 }
 0x81d   :  { %2272 = vmatprep.subr.bf16.mxu1 %v2410_v0 }
 0x8ee   :  { %v697_v7 = vpop.f32.mrb[4].mxu1 }
 0x8ef   :  { %702 = vrot.lane.b32.xlu0 %v697_v7, %s2422_s21  ;;  %v2006_v9 = vpop.f32.mrb[5].mxu1 }
 0x961   :  { %v703_v10 = vpop.permute.xlu0 %702 }
 0x962   :  { %v705_v11 = vadd.f32 %v703_v10, %v2628_v44 }
 0x964   :  { %2398 = vtanh.f32 %v705_v11 }
 0x96e   :  { %v2399_v12 = vpop.eup %2398 }
 0x96f   :  { %708 = vrot.lane.b32.xlu1 %v2399_v12, %s2423_s22 }
 0x9e1   :  { %v709_v13 = vpop.permute.xlu1 %708 }
 0x9e2   :  { %2012 = vmatmul.mubr.msk.f32.vlgmr.msra.gmra.mrb[10].mxu0 %vm299_vm7, %v709_v13 }
 0x9e3   :  { %2025 = vmatprep.mubr.msk.f32.mxu0 %vm2411_vm0, %v2412_v8  ;;  %2223 = vmatpush3.bf16.msk.msra.mxu0 %vm2611_vm6, %v2221_v24 }
 0x9e4   :  { %2224 = vmatprep.subr.bf16.mxu0 %v2410_v0 }
 0xab5   :  { %v778_v14 = vpop.f32.mrb[10].mxu0 }
 0xab6   :  { %783 = vrot.lane.b32.xlu0 %v778_v14, %s2424_s23  ;;  %v2013_v15 = vpop.f32.mrb[11].mxu0 }
 0xb28   :  { %v784_v16 = vpop.permute.xlu0 %783 }
 0xb29   :  { %v786_v17 = vadd.f32 %v784_v16, %v2628_v44 }
 0xb2b   :  { %2400 = vtanh.f32 %v786_v17 }
 0xb35   :  { %v2401_v18 = vpop.eup %2400 }
 0xb36   :  { %789 = vrot.lane.b32.xlu1 %v2401_v18, %s2425_s0 }
 0xba8   :  { %v790_v19 = vpop.permute.xlu1 %789 }
 0xba9   :  { %2019 = vmatmul.mubr.msk.f32.vlgmr.msra.gmra.mrb[6].mxu1 %vm299_vm7, %v790_v19 }
 0xbaa   :  { %2130 = vmatprep.mubr.msk.f32.mxu1 %vm2411_vm0, %v2412_v8 }
 0xc7c   :  { %v859_v20 = vpop.f32.mrb[6].mxu1 }
 0xc7d   :  { %864 = vrot.lane.b32.xlu0 %v859_v20, %s2426_s1  ;;  %v2020_v21 = vpop.f32.mrb[7].mxu1 }
 0xcef   :  { %v865_v25 = vpop.permute.xlu0 %864 }
 0xcf0   :  { %v867_v26 = vadd.f32 %v865_v25, %v2628_v44 }
 0xcf2   :  { %2402 = vtanh.f32 %v867_v26 }
 0xcfc   :  { %v2403_v27 = vpop.eup %2402 }
 0xcfd   :  { %879 = vrot.lane.b32.xlu1 %v2403_v27, %s2427_s27 }
 0xd6f   :  { %v880_v28 = vpop.permute.xlu1 %879 }
 0xd70   :  { %2026 = vmatmul.mubr.msk.f32.vlgmr.msra.gmra.mrb[12].mxu0 %vm299_vm7, %v880_v28 }
 0xd71   :  { %2060 = vmatprep.mubr.msk.f32.mxu0 %vm2411_vm0, %v2412_v8 }
 0xe43   :  { %v952_v30 = vpop.f32.mrb[12].mxu0 }
 0xe44   :  { %v2694_v31 = vadd.f32 %v1797_v29, %v952_v30  ;;  %v2027_v32 = vpop.f32.mrb[13].mxu0 }
 0xe46   :  { %v959_v33 = vand.u32 2139095040, %v2694_v31  ;;  %v956_v37 = vand.u32 2147483647, %v2694_v31  ;;  %vm958_vm15 = vcmp.lt.s32.totalorder %v2694_v31, 0 }
 0xe48   :  { %v960_v34 = vshrl.u32 %v959_v33, 23  ;;  %v963_v40 = vand.u32 8388607, %v956_v37  ;;  %vm957_vm1 = vcmp.le.f32.partialorder %v956_v37, 0.7853982 }
 0xe4a   :  { %v1800_v35 = vadd.s32 4294967169, %v960_v34  ;;  %v964_v59 = vor.u32 8388608, %v963_v40 }
 0xe4c   :  { %v966_v36 = vadd.s32 1, %v1800_v35  ;;  %v1004_v11 = vshll.u32 %v964_v59, 8  ;;  %v1163_v59 = vlaneseq }
 0xe4e   :  { %vm967_vm8 = vcmp.gt.s32.totalorder %v966_v36, 0  ;;  %v2716_v37 = vand.u32 127, %v1163_v59 }
 0xe4f   :  { %v968_v38 = vsel %vm967_vm8, %v966_v36, 0  ;;  %vm1048_vm8 = vweird.f32 %v2694_v31 }
 0xe50   :  { %v970_v39 = vand.u32 31, %v968_v38  ;;  %v969_v42 = vshrl.u32 %v968_v38, 5 }
 0xe52   :  { %v971_v41 = vsub.s32 32, %v970_v39  ;;  %v973_v44 = vshll.u32 %v2428_v43, %v970_v39  ;;  %v976_v46 = vshll.u32 %v2429_v45, %v970_v39  ;;  %v979_v50 = vshll.u32 %v2430_v48, %v970_v39 }
 0xe53   :  { %v982_v53 = vshll.u32 %v2431_v51, %v970_v39  ;;  %v985_v56 = vshll.u32 %v2432_v54, %v970_v39  ;;  %vm988_vm9 = vcmp.lt.s32.totalorder %v969_v42, 1  ;;  %vm991_vm10 = vcmp.lt.s32.totalorder %v969_v42, 4 }
 0xe54   :  { %v974_v47 = vshrl.u32 %v2429_v45, %v971_v41  ;;  %v977_v49 = vshrl.u32 %v2430_v48, %v971_v41  ;;  %v980_v52 = vshrl.u32 %v2431_v51, %v971_v41  ;;  %v983_v55 = vshrl.u32 %v2432_v54, %v971_v41 }
 0xe55   :  { %v986_v58 = vshrl.u32 %v2433_v57, %v971_v41  ;;  %v972_v5 = vshrl.u32 %v2428_v43, %v971_v41  ;;  %vm990_vm11 = vcmp.lt.s32.totalorder %v969_v42, 3  ;;  %vm989_vm12 = vcmp.lt.s32.totalorder %v969_v42, 2 }
 0xe56   :  { %v975_v60 = vor.u32 %v974_v47, %v973_v44  ;;  %v978_v61 = vor.u32 %v977_v49, %v976_v46  ;;  %v981_v62 = vor.u32 %v980_v52, %v979_v50  ;;  %v984_v63 = vor.u32 %v983_v55, %v982_v53 }
 0xe57   :  { %v987_v1 = vor.u32 %v986_v58, %v985_v56  ;;  %v2434_v55 = vmov 1   ;;  %v2435_v56 = vmov 0  }
 0xe58   :  { %v993_v2 = vsel %vm991_vm10, %v981_v62, 2102212464  ;;  %v996_v3 = vsel %vm988_vm9, %v975_v60, %v978_v61  ;;  %v1000_v4 = vsel %vm988_vm9, %v978_v61, %v981_v62  ;;  %v997_v6 = vsel %vm991_vm10, %v984_v63, 920167782  ;;  %2367 = vset.pattern.permute.xlu1 %v2434_v55  ;;  %2366 = vset.pattern.permute.xlu0 %v2435_v56 }
 0xe59   :  { %v1001_v7 = vsel %vm991_vm10, %v987_v1, 1326507024  ;;  %v998_v9 = vsel %vm990_vm11, %v981_v62, %v997_v6  ;;  %v992_v12 = vsel %vm988_vm9, %v972_v5, %v975_v60  ;;  %v994_v13 = vsel %vm990_vm11, %v978_v61, %v993_v2 }
 0xe5a   :  { %v1002_v10 = vsel %vm990_vm11, %v984_v63, %v1001_v7  ;;  %v999_v14 = vsel %vm989_vm12, %v996_v3, %v998_v9  ;;  %v995_v20 = vsel %vm989_vm12, %v992_v12, %v994_v13  ;;  %vm1197_vm9 = vcmp.eq.s32.totalorder %v2716_v37, 0 }
 0xe5b   :  { %v1003_v15 = vsel %vm989_vm12, %v1000_v4, %v1002_v10  ;;  %v2703_v18 = vmul.u32.u64.low %v1004_v11, %v999_v14  ;;  %v2704_v19 = vmul.u32.u64.high %v1004_v11, %v999_v14, %v2703_v18  ;;  %v1011_v22 = vmul.u32 %v1004_v11, %v995_v20 }
 0xe5c   :  { %v2700_v16 = vmul.u32.u64.low %v1004_v11, %v1003_v15  ;;  %v2701_v17 = vmul.u32.u64.high %v1004_v11, %v1003_v15, %v2700_v16  ;;  %v2722_v10 = vcvt.s32.f32 %v2716_v37  ;;  %v1808_v15 = vsel %vm1197_vm9, 1.0, %v2412_v8 }
 0xe5d   :  { %v1014_v21 = vadd.s32 1, %v2704_v19  ;;  %v2441_v20 = vmov 4  }
 0xe5e   :  { %vm1013_vm13 = vc.u32 %v2701_v17, %v2703_v18  ;;  %v1012_v35 = vadd.s32 %v2703_v18, %v2701_v17  ;;  %v2369_v18 = vpack.i.bf16 %v2412_v8, %v1808_v15 }
 0xe5f   :  { %v1015_v23 = vsel %vm1013_vm13, %v1014_v21, %v2704_v19  ;;  %v2440_v19 = vmov 3   ;;  %v2443_v21 = vmov 6  }
 0xe60   :  { %v1016_v24 = vadd.s32 %v1015_v23, %v1011_v22  ;;  %v2444_v22 = vmov 7   ;;  %v1166_v23 = vshra.s32 %v2716_v37, 3 }
 0xe62   :  { %v1017_v25 = vadd.s32 536870912, %v1016_v24 }
 0xe64   :  { %v1018_v26 = vshrl.u32 %v1017_v25, 30 }
 0xe66   :  { %v1019_v27 = vshll.u32 %v1018_v26, 30  ;;  %v1042_v48 = vsub.s32 4, %v1018_v26 }
 0xe68   :  { %v1020_v28 = vsub.s32 %v1016_v24, %v1019_v27  ;;  %v1043_v51 = vsel %vm958_vm15, %v1042_v48, %v1018_v26  ;;  %v1167_v24 = vand.u32 1, %v1166_v23 }
 0xe69   :  { %v1045_v53 = vsel %vm957_vm1, 0, %v1043_v51 }
 0xe6a   :  { %v1022_v29 = vsub.s32 0, %v1020_v28  ;;  %v1152_v54 = vadd.s32 3, %v1045_v53  ;;  %v1049_v58 = vand.u32 3, %v1045_v53  ;;  %v1168_v26 = vcvt.s32.f32 %v1167_v24 }
 0xe6b   :  { %v2447_v24 = vmov 9  }
 0xe6c   :  { %v1801_v30 = vmin.u32 %v1022_v29, %v1020_v28  ;;  %v1153_v57 = vand.u32 3, %v1152_v54  ;;  %vm1054_vm3 = vcmp.eq.s32.totalorder %v1049_v58, 2  ;;  %vm1051_vm5 = vcmp.eq.s32.totalorder %v1049_v58, 0 }
 0xe6d   :  { %vm1050_vm7 = vcmp.lt.s32.totalorder %v1049_v58, 2  ;;  %v1174_v29 = vshra.s32 %v2716_v37, 2 }
 0xe6e   :  { %v1024_v32 = vclz %v1801_v30  ;;  %vm1158_vm2 = vcmp.eq.s32.totalorder %v1153_v57, 2  ;;  %vm1155_vm4 = vcmp.eq.s32.totalorder %v1153_v57, 0  ;;  %vm1154_vm6 = vcmp.lt.s32.totalorder %v1153_v57, 2 }
 0xe6f   :  { %v1200_v30 = vmul.f32 2.0, %v1168_v26  ;;  %v1177_v26 = vxor.u32 4, %v2716_v37 }
 0xe70   :  { %v1802_v33 = vadd.s32 4294967294, %v1024_v32  ;;  %v1169_v32 = vxor.u32 8, %v2716_v37 }
 0xe72   :  { %vm1803_vm14 = vcmp.lt.s32.totalorder %v1802_v33, 0 }
 0xe73   :  { %v1027_v34 = vsel %vm1803_vm14, 0, %v1802_v33  ;;  %v1175_v33 = vand.u32 1, %v1174_v29 }
 0xe74   :  { %v1028_v36 = vsub.s32 32, %v1027_v34  ;;  %v1032_v38 = vsub.s32 4294967266, %v1027_v34  ;;  %v1029_v39 = vshll.u32 %v1020_v28, %v1027_v34  ;;  %v1809_v34 = vadd.f32 -1.0, %v1200_v30 }
 0xe76   :  { %v1030_v40 = vshrl.u32 %v1012_v35, %v1028_v36  ;;  %v1033_v41 = vadd.s32 127, %v1032_v38  ;;  %v1246_v38 = vshrl.u32 %v1163_v59, 7 }
 0xe78   :  { %v1031_v42 = vor.u32 %v1030_v40, %v1029_v39  ;;  %v1034_v43 = vshll.u32 %v1033_v41, 23  ;;  %v1170_v39 = vcvt.s32.f32 %v1169_v32  ;;  %v1176_v40 = vcvt.s32.f32 %v1175_v33 }
 0xe7a   :  { %v1035_v44 = vor.u32 4788187, %v1034_v43  ;;  %v1038_v46 = vcvt.s32.f32 %v1031_v42  ;;  %v2754_v42 = vsub.s32 0, %v1246_v38 }
 0xe7c   :  { %v1036_v45 = vand.u32 2147483647, %v1035_v44 }
 0xe7e   :  { %v1039_v47 = vmul.f32 %v1038_v46, %v1036_v45 }
 0xe80   :  { %v1040_v49 = vxor.u32 2147483648, %v1039_v47 }
 0xe82   :  { %v1041_v50 = vsel %vm958_vm15, %v1040_v49, %v1039_v47  ;;  %v1269_v49 = vmul.f32 2.0, %v1176_v40 }
 0xe83   :  { %v1044_v52 = vsel %vm957_vm1, %v2694_v31, %v1041_v50 }
 0xe84   :  { %2404 = vcosq.f32 %v1044_v52 }
 0xe85   :  { %2406 = vsinq.f32 %v1044_v52 }
 0xe8e   :  { %v2405_v60 = vpop.eup %2404 }
 0xe8f   :  { %v2407_v61 = vpop.eup %2406  ;;  %v1055_v62 = vxor.u32 2147483648, %v2405_v60 }
 0xe90   :  { %v1052_v63 = vxor.u32 2147483648, %v2407_v61 }
 0xe91   :  { %v1160_v1 = vsel %vm1158_vm2, %v1055_v62, %v2407_v61  ;;  %v1056_v2 = vsel %vm1054_vm3, %v1055_v62, %v2407_v61  ;;  %v1810_v61 = vadd.f32 -1.0, %v1269_v49  ;;  %vm1773_vm2 = vcmask 1024  }
 0xe92   :  { %v1157_v3 = vsel %vm1155_vm4, %v2405_v60, %v1052_v63  ;;  %v1053_v4 = vsel %vm1051_vm5, %v2405_v60, %v1052_v63 }
 0xe93   :  { %v1161_v5 = vsel %vm1154_vm6, %v1157_v3, %v1160_v1  ;;  %v1057_v6 = vsel %vm1050_vm7, %v1053_v4, %v1056_v2 }
 0xe94   :  { %v1162_v7 = vsel %vm1048_vm8, nan, %v1161_v5  ;;  %v1058_v9 = vsel %vm1048_vm8, nan, %v1057_v6 }
 0xe95   :  { %1215 = vrot.lane.b32.xlu1 %v1162_v7, %s2436_s9  ;;  %1203 = vrot.lane.b32.xlu0 %v1058_v9, %s2437_s29 }
 0xe99   :  { %1171 = vrot.lane.b32.xlu1 %v2722_v10, %s2438_s30 }
 0xf07   :  { %v1216_v11 = vpop.permute.xlu1 %1215  ;;  %v1204_v12 = vpop.permute.xlu0 %1203 }
 0xf08   :  { %v2725_v13 = vmul.f32 %v1216_v11, %v1058_v9  ;;  %v2727_v31 = vmul.f32 %v1204_v12, %v1162_v7  ;;  %v1225_v14 = vmul.f32 %v1216_v11, %v1162_v7  ;;  %v2735_v17 = vmul.f32 %v1204_v12, %v1058_v9 }
 0xf0a   :  { %1210 = vperm.xlu0 %2366, %v2727_v31   ;;  %1221 = vperm.xlu1 %2367, %v2725_v13   ;;  %v2733_v16 = vsub.f32 0.0, %v1225_v14 }
 0xf0b   :  { %v1172_v25 = vpop.permute.xlu1 %1171 }
 0xf0c   :  { %vm1173_vm10 = vcmp.eq.f32.partialorder %v1172_v25, %v1170_v39  ;;  %v2448_v25 = vmov 10  }
 0xf0e   :  { %2374 = vset.pattern.permute.xlu0 %v2434_v55  ;;  %2368 = vset.pattern.permute.xlu1 %v2435_v56 }
 0xf0f   :  { %1253 = vperm.xlu0 %2374, %v2733_v16   ;;  %1239 = vperm.xlu1 %2368, %v2735_v17  }
 0xf13   :  { %1229 = vrot.lane.b32.xlu0 %v1808_v15, %s2439_s14  ;;  %2370 = vrot.lane.b32.xlu1 %v2369_v18, %s2438_s30 }
 0xf14   :  { %2375 = vset.pattern.permute.xlu0 %v2440_v19  ;;  %2376 = vset.pattern.permute.xlu1 %v2441_v20 }
 0xf17   :  { %1272 = vperm.xlu0 %2375, %v2727_v31   ;;  %1234 = vrot.lane.b32.xlu1 %v2412_v8, %s2439_s14 }
 0xf1b   :  { %1277 = vperm.xlu1 %2376, %v2725_v13   ;;  %1179 = vrot.lane.b32.xlu0 %v2722_v10, %s2442_s15 }
 0xf1c   :  { %2379 = vset.pattern.permute.xlu0 %v2443_v21 }
 0xf1f   :  { %2377 = vset.pattern.permute.xlu1 %v2440_v19 }
 0xf20   :  { %1298 = vperm.xlu1 %2377, %v2735_v17  }
 0xf24   :  { %2378 = vset.pattern.permute.xlu1 %v2441_v20 }
 0xf25   :  { %1307 = vperm.xlu1 %2378, %v2733_v16  }
 0xf29   :  { %2380 = vset.pattern.permute.xlu1 %v2444_v22 }
 0xf89   :  { %v1211_v27 = vpop.permute.xlu0 %1210  ;;  %v1222_v28 = vpop.permute.xlu1 %1221 }
 0xf8a   :  { %v1213_v41 = vmul.f32 %v1809_v34, %v1211_v27  ;;  %v1224_v51 = vmul.f32 %v1809_v34, %v1222_v28  ;;  %v1178_v27 = vcvt.s32.f32 %v1177_v26 }
 0xf8c   :  { %v1243_v50 = vmul.f32 0.0, %v1213_v41  ;;  %v1263_v57 = vmul.f32 %v1808_v15, %v1213_v41 }
 0xf8e   :  { %v1254_v35 = vpop.permute.xlu0 %1253  ;;  %v1240_v36 = vpop.permute.xlu1 %1239 }
 0xf8f   :  { %v1242_v45 = vmul.f32 %v1808_v15, %v1240_v36  ;;  %v1262_v52 = vmul.f32 0.0, %v1240_v36  ;;  %v1182_v36 = vshra.s32 %v2716_v37, 1 }
 0xf91   :  { %v1244_v58 = vsub.f32 %v1242_v45, %v1243_v50  ;;  %v1264_v62 = vadd.f32 %v1263_v57, %v1262_v52  ;;  %v1183_v45 = vand.u32 1, %v1182_v36 }
 0xf92   :  { %v2371_v43 = vpop.permute.xlu1 %2370  ;;  %v1230_v46 = vpop.permute.xlu0 %1229 }
 0xf93   :  { %v2372_v44 = vunpack.i.l.bf16 %v2371_v43  ;;  %v2373_v47 = vunpack.i.h.bf16 %v2371_v43  ;;  %v1184_v49 = vcvt.s32.f32 %v1183_v45 }
 0xf95   :  { %v1231_v48 = vsel %vm1173_vm10, %v2372_v44, %v1230_v46 }
 0xf96   :  { %v1248_v53 = vrot.slane %v1231_v48, %v2754_v42  ;;  %v1235_v54 = vpop.permute.xlu1 %1234  ;;  %v1273_v4 = vpop.permute.xlu0 %1272 }
 0xf97   :  { %v1236_v55 = vsel %vm1173_vm10, %v2373_v47, %v1235_v54  ;;  %v1275_v9 = vmul.f32 %v1810_v61, %v1273_v4 }
 0xf98   :  { %v1249_v59 = vmul.f32 %v1248_v53, %v1224_v51  ;;  %v1259_v60 = vrot.slane %v1236_v55, %v2754_v42  ;;  %v1267_v5 = vmul.f32 %v1254_v35, %v1248_v53 }
 0xf9a   :  { %v1250_v63 = vadd.f32 %v1249_v59, %v1244_v58  ;;  %v1260_v1 = vmul.f32 %v1259_v60, %v1254_v35  ;;  %v1265_v2 = vmul.f32 %v1259_v60, %v1224_v51  ;;  %v1278_v3 = vpop.permute.xlu1 %1277  ;;  %v1180_v28 = vpop.permute.xlu0 %1179  ;;  %v1319_v51 = vmul.f32 2.0, %v1184_v49  ;;  %v1421_v60 = vld [vmem:[%s2998_s10 + $0x10] sm:$0xff] }
 0xf9b   :  { %vm1181_vm11 = vcmp.eq.f32.partialorder %v1180_v28, %v1178_v27  ;;  %v1280_v32 = vmul.f32 %v1810_v61, %v1278_v3  ;;  %v1424_v3 = vld [vmem:[%s2998_s10 + $0x28] sm:$0xff]  ;;  %v1431_v27 = vld [vmem:[%s2998_s10 + $0x60] sm:$0xff] }
 0xf9c   :  { %v1261_v6 = vsub.f32 %v1250_v63, %v1260_v1  ;;  %v1266_v7 = vadd.f32 %v1265_v2, %v1264_v62  ;;  %v2778_v52 = vadd.f32 -1.0, %v1319_v51  ;;  %v1423_v2 = vld [vmem:[%s2998_s10 + $0x20] sm:$0xff]  ;;  %v1432_v28 = vld [vmem:[%s2998_s10 + $0x68] sm:$0xff] }
 0xf9d   :  { %v2231_v4 = vpack.c.bf16 %v1424_v3, %v1423_v2 }
 0xf9e   :  { %v1268_v11 = vadd.f32 %v1267_v5, %v1266_v7  ;;  %1283 = vrot.lane.b32.xlu1 %v1261_v6, %s2445_s2  ;;  %1281 = vrot.lane.b32.xlu0 %v1261_v6, %s2442_s15  ;;  %v1313_v19 = vmul.f32 %v1275_v9, %v1261_v6  ;;  %v1425_v5 = vld [vmem:[%s2998_s10 + $0x30] sm:$0xff] }
 0xf9f   :  { %v1299_v12 = vpop.permute.xlu1 %1298 }
 0xfa0   :  { %v1301_v14 = vmul.f32 %v1299_v12, %v1261_v6  ;;  %v1302_v15 = vmul.f32 %v1275_v9, %v1268_v11  ;;  %v1312_v18 = vmul.f32 %v1299_v12, %v1268_v11  ;;  %v1426_v6 = vld [vmem:[%s2998_s10 + $0x38] sm:$0xff]  ;;  %v1427_v9 = vld [vmem:[%s2998_s10 + $0x40] sm:$0xff] }
 0xfa1   :  { %v2234_v7 = vpack.c.bf16 %v1426_v6, %v1425_v5 }
 0xfa2   :  { %v1303_v20 = vsub.f32 %v1301_v14, %v1302_v15  ;;  %v1314_v23 = vadd.f32 %v1313_v19, %v1312_v18  ;;  %1294 = vrot.lane.b32.xlu1 %v1268_v11, %s2445_s2  ;;  %1292 = vrot.lane.b32.xlu0 %v1268_v11, %s2442_s15  ;;  %v1428_v11 = vld [vmem:[%s2998_s10 + $0x48] sm:$0xff]  ;;  %v1429_v14 = vld [vmem:[%s2998_s10 + $0x50] sm:$0xff]  ;;  %v1185_v19 = vxor.u32 2, %v2716_v37 }
 0xfa3   :  { %v2237_v12 = vpack.c.bf16 %v1428_v11, %v1427_v9  ;;  %v1430_v15 = vld [vmem:[%s2998_s10 + $0x58] sm:$0xff] }
 0xfa4   :  { %v1308_v30 = vpop.permute.xlu1 %1307  ;;  %v2240_v18 = vpack.c.bf16 %v1430_v15, %v1429_v14  ;;  %v1436_v15 = vld [vmem:[%s2999_s11 + $0x8] sm:$0xff] }
 0xfa6   :  { %1327 = vperm.xlu1 %2380, %v2725_v13   ;;  %1322 = vperm.xlu0 %2379, %v2727_v31  }
 0xfaa   :  { %2381 = vset.pattern.permute.xlu1 %v2443_v21  ;;  %1187 = vrot.lane.b32.xlu0 %v2722_v10, %s2446_s5  ;;  %v1285_v21 = vsel %vm1181_vm11, 1, %v2435_v56 }
 0xfab   :  { %1348 = vperm.xlu1 %2381, %v2735_v17   ;;  %2383 = vset.pattern.permute.xlu0 %v2447_v24  ;;  %v1289_v29 = vrot.slane %v1285_v21, %v2754_v42  ;;  %v2243_v21 = vpack.c.bf16 %v1432_v28, %v1431_v27  ;;  %v1437_v27 = vld [vmem:[%s2999_s11 + $0x10] sm:$0xff]  ;;  %v1438_v28 = vld [vmem:[%s2999_s11 + $0x18] sm:$0xff] }
 0xfad   :  { %vm1290_vm12 = vcmp.eq.s32.totalorder %v1289_v29, 1 }
 0xfaf   :  { %2382 = vset.pattern.permute.xlu1 %v2444_v22 }
 0xfb0   :  { %1357 = vperm.xlu1 %2382, %v2733_v16  }
 0xfb4   :  { %2384 = vset.pattern.permute.xlu1 %v2448_v25 }
0x1010   :  { %v1284_v33 = vpop.permute.xlu1 %1283  ;;  %v1282_v34 = vpop.permute.xlu0 %1281 }
0x1011   :  { %v1291_v35 = vsel %vm1290_vm12, %v1282_v34, %v1284_v33  ;;  %v1433_v34 = vld [vmem:[%s2998_s10 + $0x70] sm:$0xff] }
0x1012   :  { %v1304_v22 = vmul.f32 %v1291_v35, %v1280_v32  ;;  %v1317_v48 = vmul.f32 %v1308_v30, %v1291_v35  ;;  %v1434_v35 = vld [vmem:[%s2998_s10 + $0x78] sm:$0xff] }
0x1013   :  { %v2246_v36 = vpack.c.bf16 %v1434_v35, %v1433_v34  ;;  %v1440_v34 = vld [vmem:[%s2999_s11 + $0x28] sm:$0xff] }
0x1014   :  { %v1295_v38 = vpop.permute.xlu1 %1294  ;;  %v1293_v39 = vpop.permute.xlu0 %1292  ;;  %v1305_v41 = vadd.f32 %v1304_v22, %v1303_v20  ;;  %v1186_v20 = vcvt.s32.f32 %v1185_v19 }
0x1015   :  { %v1296_v40 = vsel %vm1290_vm12, %v1293_v39, %v1295_v38 }
0x1016   :  { %v1310_v43 = vmul.f32 %v1308_v30, %v1296_v40  ;;  %v1315_v44 = vmul.f32 %v1296_v40, %v1280_v32 }
0x1018   :  { %v1311_v46 = vsub.f32 %v1305_v41, %v1310_v43  ;;  %v1316_v47 = vadd.f32 %v1315_v44, %v1314_v23 }
0x101a   :  { %1333 = vrot.lane.b32.xlu1 %v1311_v46, %s2437_s29  ;;  %1331 = vrot.lane.b32.xlu0 %v1311_v46, %s2446_s5  ;;  %v1318_v50 = vadd.f32 %v1317_v48, %v1316_v47 }
0x101e   :  { %1344 = vrot.lane.b32.xlu1 %v1318_v50, %s2437_s29  ;;  %1342 = vrot.lane.b32.xlu0 %v1318_v50, %s2446_s5 }
0x1022   :  { %1377 = vperm.xlu1 %2384, %v2725_v13   ;;  %1372 = vperm.xlu0 %2383, %v2727_v31  }
0x1025   :  { %v2780_v53 = vpop.permute.xlu1 %1327  ;;  %v1323_v54 = vpop.permute.xlu0 %1322 }
0x1026   :  { %2385 = vset.pattern.permute.xlu1 %v2447_v24  ;;  %1194 = vrot.lane.b32.xlu0 %v2722_v10, %s2449_s6  ;;  %v2785_v55 = vmul.f32 %v2778_v52, %v1323_v54  ;;  %v1419_v10 = vld [vmem:[%s2998_s10] sm:$0xff]  ;;  %v2868_v30 = vmul.f32 %v2778_v52, %v2780_v53 }
0x1027   :  { %1398 = vperm.xlu1 %2385, %v2735_v17   ;;  %2387 = vset.pattern.permute.xlu0 %v2448_v25  ;;  %v1420_v17 = vld [vmem:[%s2998_s10 + $0x8] sm:$0xff] }
0x1028   :  { %v2791_v13 = vmul.f32 %v2785_v55, %v1318_v50  ;;  %v1363_v31 = vmul.f32 %v2785_v55, %v1311_v46  ;;  %v2225_v63 = vpack.c.bf16 %v1420_v17, %v1419_v10 }
0x1029   :  { %v1188_v23 = vpop.permute.xlu0 %1187 }
0x102a   :  { %v2788_v57 = vpop.permute.xlu1 %1348  ;;  %2226 = vmatpush3.bf16.msra.mxu0 %v2225_v63  ;;  %2274 = vmatpush3.bf16.msra.mxu1 %v2225_v63  ;;  %vm1189_vm13 = vcmp.eq.f32.partialorder %v1188_v23, %v1186_v20  ;;  %v1192_v63 = vxor.u32 1, %v2716_v37 }
0x102b   :  { %v2795_v58 = vmul.f32 %v2788_v57, %v1311_v46  ;;  %v1362_v59 = vmul.f32 %v2788_v57, %v1318_v50  ;;  %2386 = vset.pattern.permute.xlu1 %v2448_v25  ;;  %2227 = vmatprep.subr.bf16.mxu0 %v2410_v0  ;;  %v1335_v24 = vsel %vm1189_vm13, 1, %v2435_v56  ;;  %v1190_v46 = vand.u32 1, %v2716_v37  ;;  %v1435_v37 = vld [vmem:[%s2999_s11] sm:$0xff] }
0x102c   :  { %1407 = vperm.xlu1 %2386, %v2733_v16   ;;  %v1422_v16 = vld [vmem:[%s2998_s10 + $0x18] sm:$0xff]  ;;  %2275 = vmatprep.subr.bf16.mxu1 %v2410_v0  ;;  %v1339_v25 = vrot.slane %v1335_v24, %v2754_v42  ;;  %v2249_v20 = vpack.c.bf16 %v1436_v15, %v1435_v37  ;;  %v1813_v37 = vld [vmem:[%s3000_s12] ss:$0 sm:$0xff] }
0x102d   :  { %v1353_v61 = vsub.f32 %v2795_v58, %v2791_v13  ;;  %v2810_v62 = vadd.f32 %v1363_v31, %v1362_v59  ;;  %v2228_v1 = vpack.c.bf16 %v1422_v16, %v1421_v60  ;;  %v1191_v50 = vcvt.s32.f32 %v1190_v46  ;;  %v1448_v46 = vld [vmem:[%s2999_s11 + $0x68] sm:$0xff] }
0x102e   :  { %vm2862_vm14 = vcmp.eq.s32.totalorder %v1339_v25, 1  ;;  %v1193_v16 = vcvt.s32.f32 %v1192_v63 }
0x102f   :  { %2229 = vmatpush3.bf16.msra.mxu0 %v2228_v1  ;;  %2277 = vmatpush3.bf16.msra.mxu1 %v2228_v1  ;;  %v2854_v26 = vpop.permute.xlu1 %1357  ;;  %v1369_v52 = vmul.f32 2.0, %v1191_v50 }
0x1030   :  { %2230 = vmatprep.subr.bf16.mxu0 %v2410_v0  ;;  %2278 = vmatprep.subr.bf16.mxu1 %v2410_v0 }
0x1031   :  { %v1812_v53 = vadd.f32 -1.0, %v1369_v52 }
0x1033   :  { %2232 = vmatpush3.bf16.msra.mxu0 %v2231_v4  ;;  %2280 = vmatpush3.bf16.msra.mxu1 %v2231_v4 }
0x1034   :  { %2233 = vmatprep.subr.bf16.mxu0 %v2410_v0  ;;  %2281 = vmatprep.subr.bf16.mxu1 %v2410_v0 }
0x1037   :  { %2235 = vmatpush3.bf16.msra.mxu0 %v2234_v7  ;;  %2283 = vmatpush3.bf16.msra.mxu1 %v2234_v7 }
0x1038   :  { %2236 = vmatprep.subr.bf16.mxu0 %v2410_v0  ;;  %2284 = vmatprep.subr.bf16.mxu1 %v2410_v0 }
0x103b   :  { %2238 = vmatpush3.bf16.msra.mxu0 %v2237_v12  ;;  %2286 = vmatpush3.bf16.msra.mxu1 %v2237_v12 }
0x103c   :  { %2239 = vmatprep.subr.bf16.mxu0 %v2410_v0  ;;  %2287 = vmatprep.subr.bf16.mxu1 %v2410_v0 }
0x103f   :  { %2241 = vmatpush3.bf16.msra.mxu0 %v2240_v18  ;;  %2289 = vmatpush3.bf16.msra.mxu1 %v2240_v18 }
0x1040   :  { %2242 = vmatprep.subr.bf16.mxu0 %v2410_v0  ;;  %2290 = vmatprep.subr.bf16.mxu1 %v2410_v0 }
0x1043   :  { %2244 = vmatpush3.bf16.msra.mxu0 %v2243_v21  ;;  %2292 = vmatpush3.bf16.msra.mxu1 %v2243_v21 }
0x1044   :  { %2245 = vmatprep.subr.bf16.mxu0 %v2410_v0  ;;  %2293 = vmatprep.subr.bf16.mxu1 %v2410_v0 }
0x1047   :  { %2247 = vmatpush3.bf16.msra.mxu0 %v2246_v36  ;;  %2295 = vmatpush3.bf16.msra.mxu1 %v2246_v36  ;;  %v1442_v36 = vld [vmem:[%s2999_s11 + $0x38] sm:$0xff] }
0x1048   :  { %2248 = vmatprep.subr.bf16.mxu0 %v2410_v0  ;;  %2296 = vmatprep.subr.bf16.mxu1 %v2410_v0 }
0x108c   :  { %v1334_v32 = vpop.permute.xlu1 %1333  ;;  %v1332_v33 = vpop.permute.xlu0 %1331 }
0x108d   :  { %v1341_v22 = vsel %vm2862_vm14, %v1332_v33, %v1334_v32  ;;  %v2252_v32 = vpack.c.bf16 %v1438_v28, %v1437_v27  ;;  %v1439_v33 = vld [vmem:[%s2999_s11 + $0x20] sm:$0xff] }
0x108e   :  { %v1354_v38 = vmul.f32 %v1341_v22, %v2868_v30  ;;  %v1367_v49 = vmul.f32 %v2854_v26, %v1341_v22  ;;  %v2255_v35 = vpack.c.bf16 %v1440_v34, %v1439_v33  ;;  %v1441_v22 = vld [vmem:[%s2999_s11 + $0x30] sm:$0xff] }
0x1090   :  { %v1345_v39 = vpop.permute.xlu1 %1344  ;;  %v1343_v40 = vpop.permute.xlu0 %1342  ;;  %v1355_v43 = vadd.f32 %v1354_v38, %v1353_v61  ;;  %v2258_v38 = vpack.c.bf16 %v1442_v36, %v1441_v22 }
0x1091   :  { %v1346_v41 = vsel %vm2862_vm14, %v1343_v40, %v1345_v39  ;;  %v1444_v39 = vld [vmem:[%s2999_s11 + $0x48] sm:$0xff] }
0x1092   :  { %v1360_v44 = vmul.f32 %v2854_v26, %v1346_v41  ;;  %v1365_v45 = vmul.f32 %v1346_v41, %v2868_v30  ;;  %v1445_v41 = vld [vmem:[%s2999_s11 + $0x50] sm:$0xff] }
0x1094   :  { %v1361_v47 = vsub.f32 %v1355_v43, %v1360_v44  ;;  %v1366_v48 = vadd.f32 %v1365_v45, %v2810_v62  ;;  %v1446_v43 = vld [vmem:[%s2999_s11 + $0x58] sm:$0xff]  ;;  %v1447_v45 = vld [vmem:[%s2999_s11 + $0x60] sm:$0xff] }
0x1095   :  { %v2264_v44 = vpack.c.bf16 %v1446_v43, %v1445_v41 }
0x1096   :  { %1383 = vrot.lane.b32.xlu1 %v1361_v47, %s2436_s9  ;;  %1381 = vrot.lane.b32.xlu0 %v1361_v47, %s2449_s6  ;;  %v1368_v51 = vadd.f32 %v1367_v49, %v1366_v48  ;;  %v1449_v48 = vld [vmem:[%s2999_s11 + $0x70] sm:$0xff]  ;;  %v1450_v49 = vld [vmem:[%s2999_s11 + $0x78] sm:$0xff] }
0x1097   :  { %v2270_v50 = vpack.c.bf16 %v1450_v49, %v1449_v48 }
0x109a   :  { %1394 = vrot.lane.b32.xlu1 %v1368_v51, %s2436_s9  ;;  %1392 = vrot.lane.b32.xlu0 %v1368_v51, %s2449_s6 }
0x10a1   :  { %v1378_v54 = vpop.permute.xlu1 %1377  ;;  %v1373_v13 = vpop.permute.xlu0 %1372 }
0x10a2   :  { %v1375_v31 = vmul.f32 %v1812_v53, %v1373_v13  ;;  %v1380_v5 = vmul.f32 %v1812_v53, %v1378_v54 }
0x10a4   :  { %v1402_v59 = vmul.f32 %v1375_v31, %v1368_v51  ;;  %v1413_v10 = vmul.f32 %v1375_v31, %v1361_v47 }
0x10a5   :  { %v1195_v1 = vpop.permute.xlu0 %1194 }
0x10a6   :  { %v1399_v58 = vpop.permute.xlu1 %1398  ;;  %vm1196_vm15 = vcmp.eq.f32.partialorder %v1195_v1, %v1193_v16 }
0x10a7   :  { %v1401_v17 = vmul.f32 %v1399_v58, %v1361_v47  ;;  %v1412_v60 = vmul.f32 %v1399_v58, %v1368_v51  ;;  %v1385_v2 = vsel %vm1196_vm15, 1, %v2435_v56  ;;  %v2267_v47 = vpack.c.bf16 %v1448_v46, %v1447_v45 }
0x10a8   :  { %v1389_v3 = vrot.slane %v1385_v2, %v2754_v42 }
0x10a9   :  { %v1403_v61 = vsub.f32 %v1401_v17, %v1402_v59  ;;  %v1414_v62 = vadd.f32 %v1413_v10, %v1412_v60 }
0x10aa   :  { %vm1390_vm1 = vcmp.eq.s32.totalorder %v1389_v3, 1 }
0x10ab   :  { %v1408_v4 = vpop.permute.xlu1 %1407 }
0x1108   :  { %v1384_v6 = vpop.permute.xlu1 %1383  ;;  %v1382_v7 = vpop.permute.xlu0 %1381 }
0x1109   :  { %v1391_v9 = vsel %vm1390_vm1, %v1382_v7, %v1384_v6 }
0x110a   :  { %v1404_v11 = vmul.f32 %v1391_v9, %v1380_v5  ;;  %v1417_v23 = vmul.f32 %v1408_v4, %v1391_v9 }
0x110c   :  { %v1395_v12 = vpop.permute.xlu1 %1394  ;;  %v1393_v14 = vpop.permute.xlu0 %1392  ;;  %v1405_v18 = vadd.f32 %v1404_v11, %v1403_v61 }
0x110d   :  { %v1396_v56 = vsel %vm1390_vm1, %v1393_v14, %v1395_v12 }
0x110e   :  { %v1410_v42 = vmul.f32 %v1408_v4, %v1396_v56  ;;  %v1415_v19 = vmul.f32 %v1396_v56, %v1380_v5 }
0x1110   :  { %v1411_v24 = vsub.f32 %v1405_v18, %v1410_v42  ;;  %v1416_v25 = vadd.f32 %v1415_v19, %v1414_v62 }
0x1112   :  { %v1418_v21 = vadd.f32 %v1417_v23, %v1416_v25  ;;  %2061 = vmatmul.mubr.f32.vlgmr.msra.gmra.mrb[14].mxu0 %v1411_v24 }
0x1113   :  { %2250 = vmatpush3.bf16.msra.mxu0 %v2249_v20  ;;  %2095 = vmatprep.mubr.msk.f32.mxu0 %vm2411_vm0, %v2412_v8 }
0x1114   :  { %2131 = vmatmul.mubr.f32.vlgmr.msra.gmra.mrb[8].mxu1 %v1418_v21  ;;  %2251 = vmatprep.subr.bf16.mxu0 %v2410_v0 }
0x1115   :  { %2298 = vmatpush3.bf16.msra.mxu1 %v2249_v20  ;;  %2165 = vmatprep.mubr.msk.f32.mxu1 %vm2411_vm0, %v2412_v8  ;;  %v1443_v8 = vld [vmem:[%s2999_s11 + $0x40] sm:$0xff]  ;;  %vm1767_vm0 = vcmask 1041408  }
0x1116   :  { %2299 = vmatprep.subr.bf16.mxu1 %v2410_v0  ;;  %v2261_v40 = vpack.c.bf16 %v1444_v39, %v1443_v8 }
0x1117   :  { %2253 = vmatpush3.bf16.msra.mxu0 %v2252_v32 }
0x1118   :  { %2254 = vmatprep.subr.bf16.mxu0 %v2410_v0 }
0x1119   :  { %2301 = vmatpush3.bf16.msra.mxu1 %v2252_v32 }
0x111a   :  { %2302 = vmatprep.subr.bf16.mxu1 %v2410_v0 }
0x111b   :  { %2256 = vmatpush3.bf16.msra.mxu0 %v2255_v35 }
0x111c   :  { %2257 = vmatprep.subr.bf16.mxu0 %v2410_v0 }
0x111d   :  { %2304 = vmatpush3.bf16.msra.mxu1 %v2255_v35 }
0x111e   :  { %2305 = vmatprep.subr.bf16.mxu1 %v2410_v0 }
0x111f   :  { %2259 = vmatpush3.bf16.msra.mxu0 %v2258_v38 }
0x1120   :  { %2260 = vmatprep.subr.bf16.mxu0 %v2410_v0 }
0x1121   :  { %2307 = vmatpush3.bf16.msra.mxu1 %v2258_v38 }
0x1122   :  { %2308 = vmatprep.subr.bf16.mxu1 %v2410_v0 }
0x1123   :  { %2262 = vmatpush3.bf16.msra.mxu0 %v2261_v40 }
0x1124   :  { %2263 = vmatprep.subr.bf16.mxu0 %v2410_v0 }
0x1125   :  { %2310 = vmatpush3.bf16.msra.mxu1 %v2261_v40 }
0x1126   :  { %2311 = vmatprep.subr.bf16.mxu1 %v2410_v0 }
0x1127   :  { %2265 = vmatpush3.bf16.msra.mxu0 %v2264_v44 }
0x1128   :  { %2266 = vmatprep.subr.bf16.mxu0 %v2410_v0 }
0x1129   :  { %2313 = vmatpush3.bf16.msra.mxu1 %v2264_v44 }
0x112a   :  { %2314 = vmatprep.subr.bf16.mxu1 %v2410_v0 }
0x112b   :  { %2268 = vmatpush3.bf16.msra.mxu0 %v2267_v47 }
0x112c   :  { %2269 = vmatprep.subr.bf16.mxu0 %v2410_v0 }
0x112d   :  { %2316 = vmatpush3.bf16.msra.mxu1 %v2267_v47 }
0x112e   :  { %2317 = vmatprep.subr.bf16.mxu1 %v2410_v0 }
0x112f   :  { %2271 = vmatpush3.bf16.msra.mxu0 %v2270_v50 }
0x1131   :  { %2319 = vmatpush3.bf16.msra.mxu1 %v2270_v50 }
0x1132   :  { %2096 = vmatmul.mubr.f32.vlgmr.msra.gmra.mrb[16].mxu0 %v1418_v21 }
0x1134   :  { %2166 = vmatmul.mubr.f32.vlgmr.msra.gmra.mrb[8].mxu1 %v1411_v24 }
0x11e5   :  { %v1517_v51 = vpop.f32.mrb[14].mxu0 }
0x11e6   :  { %v2062_v52 = vpop.f32.mrb[15].mxu0 }
0x1205   :  { %v1587_v53 = vpop.f32.mrb[16].mxu0 }
0x1206   :  { %v1591_v54 = vsub.f32 %v1517_v51, %v1587_v53  ;;  %v2097_v13 = vpop.f32.mrb[17].mxu0 }
0x1207   :  { %v1728_v31 = vpop.f32.mrb[8].mxu1 }
0x1208   :  { %v1742_v58 = vmul.f32 %v1591_v54, %v2788_v57  ;;  %v1750_v59 = vmul.f32 %v1591_v54, %v2785_v55  ;;  %v1743_v10 = vmul.f32 %v1728_v31, %v2785_v55  ;;  %v1749_v17 = vmul.f32 %v1728_v31, %v2788_v57  ;;  %1734 = vrot.lane.b32.xlu1 %v1591_v54, %s2437_s29  ;;  %v2167_v0 = vpop.f32.mrb[9].mxu1 }
0x1209   :  { %1732 = vrot.lane.b32.xlu0 %v1591_v54, %s2446_s5 }
0x120a   :  { %v1744_v60 = vsub.f32 %v1742_v58, %v1743_v10  ;;  %v1751_v61 = vadd.f32 %v1750_v59, %v1749_v17 }
0x120c   :  { %1739 = vrot.lane.b32.xlu1 %v1728_v31, %s2437_s29 }
0x120d   :  { %1737 = vrot.lane.b32.xlu0 %v1728_v31, %s2446_s5 }
0x127a   :  { %v1735_v62 = vpop.permute.xlu1 %1734 }
0x127b   :  { %v1733_v63 = vpop.permute.xlu0 %1732 }
0x127c   :  { %v1736_v16 = vsel %vm2862_vm14, %v1733_v63, %v1735_v62 }
0x127d   :  { %v1745_v55 = vmul.f32 %v1736_v16, %v2868_v30  ;;  %v1754_v6 = vmul.f32 %v1736_v16, %v2854_v26 }
0x127e   :  { %v1740_v1 = vpop.permute.xlu1 %1739 }
0x127f   :  { %v1738_v57 = vpop.permute.xlu0 %1737  ;;  %v1746_v3 = vadd.f32 %v1745_v55, %v1744_v60 }
0x1280   :  { %v1741_v2 = vsel %vm2862_vm14, %v1738_v57, %v1740_v1 }
0x1281   :  { %v1747_v4 = vmul.f32 %v1741_v2, %v2854_v26  ;;  %v1752_v5 = vmul.f32 %v1741_v2, %v2868_v30 }
0x1283   :  { %v1748_v7 = vsub.f32 %v1746_v3, %v1747_v4  ;;  %v1753_v9 = vadd.f32 %v1752_v5, %v1751_v61 }
0x1285   :  { %v1755_v11 = vadd.f32 %v1754_v6, %v1753_v9  ;;  %v1756_v12 = vmul.f32 %v1748_v7, %v1748_v7 }
0x1287   :  { %v1757_v14 = vmul.f32 %v1755_v11, %v1755_v11 }
0x1289   :  { %v1758_v15 = vadd.f32 %v1757_v14, %v1756_v12 }
0x128b   :  { %v1766_v29 = vmul.f32 %v1813_v37, %v1758_v15 }
0x128d   :  { %v1768_v56 = vsel %vm1767_vm0, %v1766_v29, 0.0 }
0x128e   :  { %1769 = vadd.xlane.f32.xlu0 %v1768_v56 }
0x131b   :  { %v1770_v18 = vpop.xlane.xlu0 %1769 }
0x131c   :  { %2408 = vtanh.f32 %v1770_v18 }
0x1326   :  { %v2409_v42 = vpop.eup %2408 }
0x1327   :  { %v1772_v30 = vmul.f32 3.0, %v2409_v42 }
0x1329   :  { %1774 = vst.msk [vmem:[%s3001_s13] sm:$0x3] %vm1773_vm2, %v1772_v30 }

</bundles_post_ra>
